<compile_context>
chip_gen: v5e
topology: v5e:2x2
jax: 0.10.0
libtpu: 0.0.40
codegen_flags: <defaults>
</compile_context>

<pallas_src>
import jax
import jax.numpy as jnp
from jax.experimental import pallas as pl
from jax.experimental.pallas import tpu as pltpu

LANE = 128


def _round_up(x, m):
    return ((x + m - 1) // m) * m


def _pad_c(c):
    return max(LANE, _round_up(c, LANE))


def _pad_to(a, shape):
    return jnp.pad(a, [(0, s - d) for d, s in zip(a.shape, shape)])


def _nbytes(a):
    return int(a.size) * a.dtype.itemsize


# ---------------------------------------------------------------------------
# Fused kernel: all TemporalBlocks + AdaptiveAvgPool1d(1) + Linear
# ---------------------------------------------------------------------------
def _make_fused_kernel(layer_cfgs, T, rows, fc_b_row):
    """rows = batches_per_tile * T; activations are (rows, C_pad), batch-major."""

    def kernel(*refs):
        it = iter(refs)
        x_ref = next(it)
        layer_w = []
        for cfg in layer_cfgs:
            w1 = next(it)
            w2 = next(it)
            wds = next(it) if cfg["has_ds"] else None
            layer_w.append((w1, w2, wds))
        b_ref = next(it)        # stacked biases (n_bias, C_max) f32, VMEM
        alphas_ref = next(it)   # PReLU alphas (L, 3) f32, SMEM
        pool_ref = next(it)     # block-diagonal sum matrix (bt, rows) bf16
        wfc_ref = next(it)      # (C_last_pad, n_cls_pad) bf16
        o_ref = next(it)

        # time index of each row inside this tile (rows are batch-major: b*T + t)
        t_idx = jax.lax.broadcasted_iota(jnp.int32, (rows, 1), 0) % T

        def bias_row(row, width):
            return b_ref[row:row + 1, :width]          # (1, width) f32

        def causal_conv(h, h_bf, w_ref, b_row, k, dil, masks):
            # h: (rows, c_in_pad) f32; h_bf: same, bf16 (cast hoisted by caller).
            # Causal dilated conv (Conv1d + Chomp1d): build the k shifted taps,
            # concatenate along the lane axis and do ONE MXU dot of depth
            # K = k * c_in_pad against weights packed as (k*c_in_pad, c_out_pad).
            taps = []
            for j in range(k):                         # static unroll over taps
                s = (k - 1 - j) * dil                  # causal left shift of tap j
                if s == 0:
                    taps.append(h_bf)
                elif s >= T:                           # tap fully out of range
                    taps.append(jnp.zeros_like(h_bf))
                else:
                    rolled = pltpu.roll(h, shift=s, axis=0)
                    taps.append((rolled * masks[s]).astype(jnp.bfloat16))
            cat = taps[0] if len(taps) == 1 else jnp.concatenate(taps, axis=-1)
            out = jnp.dot(cat, w_ref[...], preferred_element_type=jnp.float32)
            return out + bias_row(b_row, w_ref.shape[-1])

        x = x_ref[...]                                 # (rows, c0_pad) f32
        x_bf = x.astype(jnp.bfloat16)                  # cast once per layer
        for l, cfg in enumerate(layer_cfgs):
            w1, w2, wds = layer_w[l]
            k, dil = cfg["k"], cfg["dilation"]
            a1 = alphas_ref[l, 0]
            a2 = alphas_ref[l, 1]
            a3 = alphas_ref[l, 2]
            # precomputed causal masks, hoisted: shared by conv1 and conv2
            masks = {s: (t_idx >= s).astype(jnp.float32)
                     for s in sorted({(k - 1 - j) * dil for j in range(k)} - {0})
                     if s < T}

            h = causal_conv(x, x_bf, w1, cfg["b1_row"], k, dil, masks)
            h = jnp.where(h >= 0.0, h, a1 * h)                   # PReLU 1
            h_bf = h.astype(jnp.bfloat16)
            # TODO(synk): nn.Dropout treated as identity (inference mode).
            net = causal_conv(h, h_bf, w2, cfg["b2_row"], k, dil, masks)
            net = jnp.where(net >= 0.0, net, a2 * net)           # PReLU 2

            if cfg["has_ds"]:                                    # 1x1 downsample
                res = jnp.dot(x_bf, wds[...],
                              preferred_element_type=jnp.float32)
                res = res + bias_row(cfg["bds_row"], wds.shape[-1])
            else:
                res = x
            x = net + res
            x = jnp.where(x >= 0.0, x, a3 * x)                   # block PReLU
            x_bf = x.astype(jnp.bfloat16)

        # Head: mean over time per batch sample as ONE matmul with the
        # block-diagonal 1s matrix (scale by 1/T in f32), then the FC layer.
        pooled = jnp.dot(pool_ref[...], x_bf,
                         preferred_element_type=jnp.float32) * (1.0 / T)
        logits = jnp.dot(pooled.astype(jnp.bfloat16), wfc_ref[...],
                         preferred_element_type=jnp.float32)
        logits = logits + bias_row(fc_b_row, wfc_ref.shape[-1])
        o_ref[...] = logits

    return kernel


# ---------------------------------------------------------------------------
# Parameter packing: pad channels to lane-dense 128 multiples, fuse the k taps
# into (k*C_in_pad, C_out_pad) bf16 weight matrices, coalesce all biases into
# one stacked array, stack PReLU alphas for SMEM.
# ---------------------------------------------------------------------------
def pack_params(params):
    metas = []
    for p in params["blocks"]:
        k, cin, cout = p["w1"].shape
        metas.append((int(k), cin, cout, _pad_c(cin), _pad_c(cout)))
    c_last, n_cls = params["w_fc"].shape
    clp, nclsp = _pad_c(c_last), _pad_c(n_cls)
    cmax = max([m[4] for m in metas] + [nclsp])

    bias_list = []

    def add_bias(vec):                                  # vec: (1, width) f32
        row = jnp.zeros((1, cmax), jnp.float32).at[:, :vec.shape[1]].set(vec)
        bias_list.append(row)
        return len(bias_list) - 1

    blocks, alphas = [], []
    for i, p in enumerate(params["blocks"]):
        k, cin, cout, cinp, coutp = metas[i]
        w1 = _pad_to(p["w1"], (k, cinp, coutp)).astype(jnp.bfloat16)
        w2 = _pad_to(p["w2"], (k, coutp, coutp)).astype(jnp.bfloat16)
        blk = {
            "k": k, "dilation": 2 ** i, "has_ds": cin != cout,
            "cin_pad": cinp, "cout_pad": coutp,
            "w1": w1.reshape(k * cinp, coutp),          # taps stacked along K
            "w2": w2.reshape(k * coutp, coutp),
            "b1_row": add_bias(p["b1"]),
            "b2_row": add_bias(p["b2"]),
        }
        if blk["has_ds"]:
            blk["w_ds"] = _pad_to(p["w_ds"], (cinp, coutp)).astype(jnp.bfloat16)
            blk["bds_row"] = add_bias(p["b_ds"])
        blocks.append(blk)
        alphas.append(p["alphas"].reshape(3))
    fc_b_row = add_bias(params["b_fc"])

    return {
        "blocks": blocks,
        "alphas": jnp.stack(alphas, axis=0),            # (L, 3) f32 -> SMEM
        "biases": jnp.concatenate(bias_list, axis=0),   # (n_bias, cmax) f32
        "fc_b_row": fc_b_row,
        "w_fc": _pad_to(params["w_fc"], (clp, nclsp)).astype(jnp.bfloat16),
        "n_classes": int(n_cls),
    }


# ---------------------------------------------------------------------------
# Batch-tile selection: rows = bt*T must be a multiple of 8 (or the full B*T);
# prefer >= 2 grid tiles so v7x's second TensorCore gets work.
# ---------------------------------------------------------------------------
def _pick_batch_tile(B, T, max_rows):
    valid = []
    for d in range(1, B + 1):
        if B % d:
            continue
        rows = d * T
        if rows % 8 != 0 and d != B:      # (8,128) sublane constraint
            continue
        valid.append((d, rows))
    in_budget = [d for d, r in valid if r <= max_rows]
    multi = [d for d in in_budget if B // d >= 2]
    if multi:
        return max(multi)
    if in_budget:
        return max(in_budget)
    return min(d for d, _ in valid)


# ---------------------------------------------------------------------------
# Forward wrapper
# ---------------------------------------------------------------------------
def tcn_forward(x_ncw, packed, *, max_rows_per_tile=1024, single_buffer_weights=True):
    """x_ncw: (B, C_in, T) float32 (PyTorch NCW) -> (B, num_classes)."""
    B, C0, T = x_ncw.shape
    c0_pad = packed["blocks"][0]["cin_pad"]
    ncls_pad = packed["w_fc"].shape[-1]

    # NCW -> channels-last rows (B*T, C0_pad): batch folded into matmul M.
    x = jnp.transpose(x_ncw, (0, 2, 1)).astype(jnp.float32)       # (B, T, C0)
    x = jnp.pad(x, ((0, 0), (0, 0), (0, c0_pad - C0)))
    x2d = x.reshape(B * T, c0_pad)

    bt = _pick_batch_tile(B, T, max_rows_per_tile)
    n_tiles = B // bt
    rows = bt * T

    # block-diagonal "sum over time" matrix for the mean-pool head
    pool = jnp.repeat(jnp.eye(bt, dtype=jnp.float32), T, axis=1).astype(jnp.bfloat16)

    layer_cfgs, weight_args = [], []
    for blk in packed["blocks"]:
        cfg = {"k": blk["k"], "dilation": blk["dilation"], "has_ds": blk["has_ds"],
               "b1_row": blk["b1_row"], "b2_row": blk["b2_row"]}
        if blk["has_ds"]:
            cfg["bds_row"] = blk["bds_row"]
        layer_cfgs.append(cfg)
        weight_args += [blk["w1"], blk["w2"]]
        if blk["has_ds"]:
            weight_args.append(blk["w_ds"])

    args = [x2d] + weight_args + [packed["biases"], packed["alphas"], pool,
                                  packed["w_fc"]]

    # VMEM budget: raise v5e's 16 MiB default scoped limit, cap at v7x-safe 64 MiB.
    c_wide = max(max(blk["k"] * blk["cin_pad"], blk["k"] * blk["cout_pad"])
                 for blk in packed["blocks"])
    weight_bytes = (sum(_nbytes(a) for a in weight_args) + _nbytes(packed["biases"])
                    + _nbytes(packed["w_fc"]) + _nbytes(pool))
    est = (2 * rows * c0_pad * 4 + 2 * bt * ncls_pad * 4
           + 2 * weight_bytes + 8 * rows * c_wide * 4)
    vmem_limit = int(min(max(2 * est, 32 * 2 ** 20), 64 * 2 ** 20))

    kernel = _make_fused_kernel(layer_cfgs, T, rows, packed["fc_b_row"])

    def build_and_call(weight_mode):
        wkw = {} if weight_mode is None else {"pipeline_mode": weight_mode}
        in_specs = [pl.BlockSpec((rows, c0_pad), lambda i: (i, 0))]
        in_specs += [pl.BlockSpec(w.shape, lambda i: (0, 0), **wkw)
                     for w in weight_args]
        in_specs += [
            pl.BlockSpec(packed["biases"].shape, lambda i: (0, 0), **wkw),
            pl.BlockSpec(memory_space=pltpu.MemorySpace.SMEM),    # PReLU alphas
            pl.BlockSpec(pool.shape, lambda i: (0, 0), **wkw),
            pl.BlockSpec(packed["w_fc"].shape, lambda i: (0, 0), **wkw),
        ]
        return pl.pallas_call(
            kernel,
            out_shape=jax.ShapeDtypeStruct((n_tiles, bt, ncls_pad), jnp.float32),
            grid=(n_tiles,),
            in_specs=in_specs,
            out_specs=pl.BlockSpec((None, bt, ncls_pad), lambda i: (i, 0, 0)),
            compiler_params=pltpu.CompilerParams(
                dimension_semantics=("parallel",),
                vmem_limit_bytes=vmem_limit),
        )(*args)

    if single_buffer_weights:
        # Grid-invariant weights only need one buffer; fall back gracefully if
        # this JAX/Mosaic build rejects pipeline_mode=pl.Buffered(1).
        try:
            out = jax.block_until_ready(build_and_call(pl.Buffered(1)))
        except Exception:
            out = build_and_call(None)
    else:
        out = build_and_call(None)

    return out.reshape(B, ncls_pad)[:, :packed["n_classes"]]


# ---------------------------------------------------------------------------
# Deterministic parameter initialization (synthetic, mirrors module shapes)
# ---------------------------------------------------------------------------
def init_params(key, num_inputs, num_channels, kernel_size, num_classes):
    blocks = []
    in_c = num_inputs
    for out_c in num_channels:
        key, k1, k2, k3, k4, k5, k6 = jax.random.split(key, 7)
        blk = {
            "w1": 0.01 * jax.random.normal(k1, (kernel_size, in_c, out_c), jnp.float32),
            "b1": 0.01 * jax.random.normal(k2, (1, out_c), jnp.float32),
            "w2": 0.01 * jax.random.normal(k3, (kernel_size, out_c, out_c), jnp.float32),
            "b2": 0.01 * jax.random.normal(k4, (1, out_c), jnp.float32),
            "alphas": jnp.full((1, 3), 0.25, jnp.float32),       # PReLU default
        }
        if in_c != out_c:
            blk["w_ds"] = 0.01 * jax.random.normal(k5, (in_c, out_c), jnp.float32)
            blk["b_ds"] = 0.01 * jax.random.normal(k6, (1, out_c), jnp.float32)
        blocks.append(blk)
        in_c = out_c
    key, kf1, kf2 = jax.random.split(key, 3)
    bound = 1.0 / (num_channels[-1] ** 0.5)
    w_fc = jax.random.uniform(kf1, (num_channels[-1], num_classes), jnp.float32, -bound, bound)
    b_fc = jax.random.uniform(kf2, (1, num_classes), jnp.float32, -bound, bound)
    return {"blocks": blocks, "w_fc": w_fc, "b_fc": b_fc}


# ---------------------------------------------------------------------------
# Pure-JAX f32 reference (same math, no Pallas) for a correctness sanity check
# ---------------------------------------------------------------------------
def _ref_block(x, p, kernel_size, dilation):
    B, T, c_in = x.shape
    pad = (kernel_size - 1) * dilation

    def causal_conv(inp, w, b):
        inp_p = jnp.pad(inp, ((0, 0), (pad, 0), (0, 0)))
        out = jnp.zeros((B, T, w.shape[-1]), jnp.float32)
        for j in range(kernel_size):
            out = out + jnp.einsum("btc,cd->btd",
                                   inp_p[:, j * dilation:j * dilation + T, :], w[j])
        return out + b

    a1, a2, a3 = p["alphas"][0]
    h = causal_conv(x, p["w1"], p["b1"])
    h = jnp.where(h >= 0, h, a1 * h)
    net = causal_conv(h, p["w2"], p["b2"])
    net = jnp.where(net >= 0, net, a2 * net)
    if "w_ds" in p:
        res = jnp.einsum("btc,cd->btd", x, p["w_ds"]) + p["b_ds"]
    else:
        res = x
    out = net + res
    return jnp.where(out >= 0, out, a3 * out)


if __name__ == "__main__":
    B, num_inputs, T = 2, 4, 16
    num_channels = [8, 16]
    kernel_size = 2
    num_classes = 32

    key = jax.random.PRNGKey(0)
    key, kx = jax.random.split(key)
    x = jax.random.normal(kx, (B, num_inputs, T), jnp.float32)   # NCW like PyTorch

    params = init_params(key, num_inputs, num_channels, kernel_size, num_classes)
    packed = pack_params(params)

    out = tcn_forward(x, packed)
    out = jax.block_until_ready(out)
    assert out.shape == (B, num_classes)

    # reference check (f32 reference vs bf16-MXU kernel)
    xr = jnp.transpose(x, (0, 2, 1))
    for i, p in enumerate(params["blocks"]):
        xr = _ref_block(xr, p, kernel_size, 2 ** i)
    ref = jnp.mean(xr, axis=1) @ params["w_fc"] + params["b_fc"]
    assert jnp.allclose(out, ref, rtol=2e-2, atol=2e-3), (out, ref)

    print("KERNEL_OK")
</pallas_src>

<mosaic_0001>
module attributes {stable_mosaic.version = 11 : i64} {
  func.func @kernel(%arg0: i32, %arg1: memref<16x128xf32, #tpu.memory_space<vmem>>, %arg2: memref<256x128xbf16, #tpu.memory_space<vmem>>, %arg3: memref<256x128xbf16, #tpu.memory_space<vmem>>, %arg4: memref<128x128xbf16, #tpu.memory_space<vmem>>, %arg5: memref<256x128xbf16, #tpu.memory_space<vmem>>, %arg6: memref<256x128xbf16, #tpu.memory_space<vmem>>, %arg7: memref<128x128xbf16, #tpu.memory_space<vmem>>, %arg8: memref<7x128xf32, #tpu.memory_space<vmem>>, %arg9: memref<2x3xf32, #tpu.memory_space<smem>>, %arg10: memref<1x16xbf16, #tpu.memory_space<vmem>>, %arg11: memref<128x128xbf16, #tpu.memory_space<vmem>>, %arg12: memref<1x1x128xf32, #tpu.memory_space<vmem>>) attributes {dimension_semantics = [#tpu.dimension_semantics<parallel>], iteration_bounds = array<i64: 2>, scalar_prefetch = 0 : i64, scratch_operands = 0 : i64, tpu.core_type = #tpu.core_type<tc>, window_params = [{transform_indices = @transform_0, window_bounds = array<i64: 16, 128>}, {pipeline_mode = #tpu.pipeline_mode<synchronous>, transform_indices = @transform_1, window_bounds = array<i64: 256, 128>}, {pipeline_mode = #tpu.pipeline_mode<synchronous>, transform_indices = @transform_2, window_bounds = array<i64: 256, 128>}, {pipeline_mode = #tpu.pipeline_mode<synchronous>, transform_indices = @transform_3, window_bounds = array<i64: 128, 128>}, {pipeline_mode = #tpu.pipeline_mode<synchronous>, transform_indices = @transform_4, window_bounds = array<i64: 256, 128>}, {pipeline_mode = #tpu.pipeline_mode<synchronous>, transform_indices = @transform_5, window_bounds = array<i64: 256, 128>}, {pipeline_mode = #tpu.pipeline_mode<synchronous>, transform_indices = @transform_6, window_bounds = array<i64: 128, 128>}, {pipeline_mode = #tpu.pipeline_mode<synchronous>, transform_indices = @transform_7, window_bounds = array<i64: 7, 128>}, {transform_indices = @transform_8, window_bounds = array<i64: 2, 3>}, {pipeline_mode = #tpu.pipeline_mode<synchronous>, transform_indices = @transform_9, window_bounds = array<i64: 1, 16>}, {pipeline_mode = #tpu.pipeline_mode<synchronous>, transform_indices = @transform_10, window_bounds = array<i64: 128, 128>}, {transform_indices = @transform_11, window_bounds = array<i64: 1, 1, 128>}]} {
    %0 = tpu.iota {dimensions = array<i32: 0>} : vector<16x1xi32>
    %c16_i32 = arith.constant 16 : i32
    %c0_i32 = arith.constant 0 : i32
    %1 = arith.cmpi eq, %c16_i32, %c0_i32 : i32
    %c1_i32 = arith.constant 1 : i32
    %2 = arith.select %1, %c1_i32, %c16_i32 : i32
    %3 = vector.broadcast %2 : i32 to vector<16x1xi32>
    %4 = arith.remsi %0, %3 : vector<16x1xi32>
    %c0_i32_0 = arith.constant 0 : i32
    %5 = vector.broadcast %c0_i32_0 : i32 to vector<16x1xi32>
    %6 = arith.cmpi ne, %4, %5 : vector<16x1xi32>
    %c0_i32_1 = arith.constant 0 : i32
    %7 = vector.broadcast %c0_i32_1 : i32 to vector<16x1xi32>
    %8 = arith.cmpi slt, %4, %7 : vector<16x1xi32>
    %c0_i32_2 = arith.constant 0 : i32
    %9 = arith.cmpi slt, %2, %c0_i32_2 : i32
    %10 = vector.broadcast %9 : i1 to vector<16x1xi1>
    %11 = vector.broadcast %10 : vector<16x1xi1> to vector<16x1xi1>
    %12 = arith.xori %8, %11 : vector<16x1xi1>
    %13 = arith.andi %12, %6 : vector<16x1xi1>
    %14 = vector.broadcast %2 : i32 to vector<16x1xi32>
    %15 = arith.addi %4, %14 : vector<16x1xi32>
    %16 = arith.select %13, %15, %4 : vector<16x1xi1>, vector<16x1xi32>
    %c0 = arith.constant 0 : index
    %c0_3 = arith.constant 0 : index
    %17 = vector.load %arg1[%c0, %c0_3] : memref<16x128xf32, #tpu.memory_space<vmem>>, vector<16x128xf32>
    %18 = arith.truncf %17 : vector<16x128xf32> to vector<16x128xbf16>
    %c0_4 = arith.constant 0 : index
    %c0_5 = arith.constant 0 : index
    %19 = memref.load %arg9[%c0_4, %c0_5] : memref<2x3xf32, #tpu.memory_space<smem>>
    %c0_6 = arith.constant 0 : index
    %c1 = arith.constant 1 : index
    %20 = memref.load %arg9[%c0_6, %c1] : memref<2x3xf32, #tpu.memory_space<smem>>
    %c0_7 = arith.constant 0 : index
    %c2 = arith.constant 2 : index
    %21 = memref.load %arg9[%c0_7, %c2] : memref<2x3xf32, #tpu.memory_space<smem>>
    %c1_i32_8 = arith.constant 1 : i32
    %22 = vector.broadcast %c1_i32_8 : i32 to vector<16x1xi32>
    %23 = arith.cmpi sge, %16, %22 : vector<16x1xi32>
    %24 = arith.extui %23 : vector<16x1xi1> to vector<16x1xi32>
    %25 = arith.sitofp %24 : vector<16x1xi32> to vector<16x1xf32>
    %c1_i32_9 = arith.constant 1 : i32
    %26 = tpu.dynamic_rotate %17 by %c1_i32_9 dim 0 : vector<16x128xf32>, i32 -> vector<16x128xf32>
    %27 = vector.broadcast %25 : vector<16x1xf32> to vector<16x128xf32>
    %28 = arith.mulf %26, %27 : vector<16x128xf32>
    %29 = arith.truncf %28 : vector<16x128xf32> to vector<16x128xbf16>
    %30 = tpu.concatenate %29, %18 in 1 : vector<16x128xbf16>, vector<16x128xbf16> -> vector<16x256xbf16>
    %c0_10 = arith.constant 0 : index
    %c0_11 = arith.constant 0 : index
    %31 = vector.load %arg2[%c0_10, %c0_11] : memref<256x128xbf16, #tpu.memory_space<vmem>>, vector<256x128xbf16>
    %cst = arith.constant dense<0.000000e+00> : vector<16x128xf32>
    %32 = tpu.matmul %30, %31, %cst {dimension_numbers = #tpu.dot_dimension_numbers<[1], [0], [0], [1], [0, 0, 1, 1], [], []>} : vector<16x256xbf16>, vector<256x128xbf16>, vector<16x128xf32> -> vector<16x128xf32>
    %c0_12 = arith.constant 0 : index
    %c0_13 = arith.constant 0 : index
    %33 = vector.load %arg8[%c0_12, %c0_13] : memref<7x128xf32, #tpu.memory_space<vmem>>, vector<1x128xf32>
    %34 = vector.broadcast %33 : vector<1x128xf32> to vector<16x128xf32>
    %35 = arith.addf %32, %34 : vector<16x128xf32>
    %cst_14 = arith.constant 0.000000e+00 : f32
    %36 = vector.broadcast %cst_14 : f32 to vector<16x128xf32>
    %37 = arith.cmpf oge, %35, %36 : vector<16x128xf32>
    %38 = vector.broadcast %19 : f32 to vector<16x128xf32>
    %39 = arith.mulf %38, %35 : vector<16x128xf32>
    %40 = arith.select %37, %35, %39 : vector<16x128xi1>, vector<16x128xf32>
    %41 = arith.truncf %40 : vector<16x128xf32> to vector<16x128xbf16>
    %c1_i32_15 = arith.constant 1 : i32
    %42 = tpu.dynamic_rotate %40 by %c1_i32_15 dim 0 : vector<16x128xf32>, i32 -> vector<16x128xf32>
    %43 = vector.broadcast %25 : vector<16x1xf32> to vector<16x128xf32>
    %44 = arith.mulf %42, %43 : vector<16x128xf32>
    %45 = arith.truncf %44 : vector<16x128xf32> to vector<16x128xbf16>
    %46 = tpu.concatenate %45, %41 in 1 : vector<16x128xbf16>, vector<16x128xbf16> -> vector<16x256xbf16>
    %c0_16 = arith.constant 0 : index
    %c0_17 = arith.constant 0 : index
    %47 = vector.load %arg3[%c0_16, %c0_17] : memref<256x128xbf16, #tpu.memory_space<vmem>>, vector<256x128xbf16>
    %cst_18 = arith.constant dense<0.000000e+00> : vector<16x128xf32>
    %48 = tpu.matmul %46, %47, %cst_18 {dimension_numbers = #tpu.dot_dimension_numbers<[1], [0], [0], [1], [0, 0, 1, 1], [], []>} : vector<16x256xbf16>, vector<256x128xbf16>, vector<16x128xf32> -> vector<16x128xf32>
    %c1_19 = arith.constant 1 : index
    %c0_20 = arith.constant 0 : index
    %49 = vector.load %arg8[%c1_19, %c0_20] : memref<7x128xf32, #tpu.memory_space<vmem>>, vector<1x128xf32>
    %50 = vector.broadcast %49 : vector<1x128xf32> to vector<16x128xf32>
    %51 = arith.addf %48, %50 : vector<16x128xf32>
    %cst_21 = arith.constant 0.000000e+00 : f32
    %52 = vector.broadcast %cst_21 : f32 to vector<16x128xf32>
    %53 = arith.cmpf oge, %51, %52 : vector<16x128xf32>
    %54 = vector.broadcast %20 : f32 to vector<16x128xf32>
    %55 = arith.mulf %54, %51 : vector<16x128xf32>
    %56 = arith.select %53, %51, %55 : vector<16x128xi1>, vector<16x128xf32>
    %c0_22 = arith.constant 0 : index
    %c0_23 = arith.constant 0 : index
    %57 = vector.load %arg4[%c0_22, %c0_23] : memref<128x128xbf16, #tpu.memory_space<vmem>>, vector<128x128xbf16>
    %cst_24 = arith.constant dense<0.000000e+00> : vector<16x128xf32>
    %58 = tpu.matmul %18, %57, %cst_24 {dimension_numbers = #tpu.dot_dimension_numbers<[1], [0], [0], [1], [0, 0, 1, 1], [], []>} : vector<16x128xbf16>, vector<128x128xbf16>, vector<16x128xf32> -> vector<16x128xf32>
    %c2_25 = arith.constant 2 : index
    %c0_26 = arith.constant 0 : index
    %59 = vector.load %arg8[%c2_25, %c0_26] : memref<7x128xf32, #tpu.memory_space<vmem>>, vector<1x128xf32>
    %60 = vector.broadcast %59 : vector<1x128xf32> to vector<16x128xf32>
    %61 = arith.addf %58, %60 : vector<16x128xf32>
    %62 = arith.addf %56, %61 : vector<16x128xf32>
    %cst_27 = arith.constant 0.000000e+00 : f32
    %63 = vector.broadcast %cst_27 : f32 to vector<16x128xf32>
    %64 = arith.cmpf oge, %62, %63 : vector<16x128xf32>
    %65 = vector.broadcast %21 : f32 to vector<16x128xf32>
    %66 = arith.mulf %65, %62 : vector<16x128xf32>
    %67 = arith.select %64, %62, %66 : vector<16x128xi1>, vector<16x128xf32>
    %68 = arith.truncf %67 : vector<16x128xf32> to vector<16x128xbf16>
    %c1_28 = arith.constant 1 : index
    %c0_29 = arith.constant 0 : index
    %69 = memref.load %arg9[%c1_28, %c0_29] : memref<2x3xf32, #tpu.memory_space<smem>>
    %c1_30 = arith.constant 1 : index
    %c1_31 = arith.constant 1 : index
    %70 = memref.load %arg9[%c1_30, %c1_31] : memref<2x3xf32, #tpu.memory_space<smem>>
    %c1_32 = arith.constant 1 : index
    %c2_33 = arith.constant 2 : index
    %71 = memref.load %arg9[%c1_32, %c2_33] : memref<2x3xf32, #tpu.memory_space<smem>>
    %c2_i32 = arith.constant 2 : i32
    %72 = vector.broadcast %c2_i32 : i32 to vector<16x1xi32>
    %73 = arith.cmpi sge, %16, %72 : vector<16x1xi32>
    %74 = arith.extui %73 : vector<16x1xi1> to vector<16x1xi32>
    %75 = arith.sitofp %74 : vector<16x1xi32> to vector<16x1xf32>
    %c2_i32_34 = arith.constant 2 : i32
    %76 = tpu.dynamic_rotate %67 by %c2_i32_34 dim 0 : vector<16x128xf32>, i32 -> vector<16x128xf32>
    %77 = vector.broadcast %75 : vector<16x1xf32> to vector<16x128xf32>
    %78 = arith.mulf %76, %77 : vector<16x128xf32>
    %79 = arith.truncf %78 : vector<16x128xf32> to vector<16x128xbf16>
    %80 = tpu.concatenate %79, %68 in 1 : vector<16x128xbf16>, vector<16x128xbf16> -> vector<16x256xbf16>
    %c0_35 = arith.constant 0 : index
    %c0_36 = arith.constant 0 : index
    %81 = vector.load %arg5[%c0_35, %c0_36] : memref<256x128xbf16, #tpu.memory_space<vmem>>, vector<256x128xbf16>
    %cst_37 = arith.constant dense<0.000000e+00> : vector<16x128xf32>
    %82 = tpu.matmul %80, %81, %cst_37 {dimension_numbers = #tpu.dot_dimension_numbers<[1], [0], [0], [1], [0, 0, 1, 1], [], []>} : vector<16x256xbf16>, vector<256x128xbf16>, vector<16x128xf32> -> vector<16x128xf32>
    %c3 = arith.constant 3 : index
    %c0_38 = arith.constant 0 : index
    %83 = vector.load %arg8[%c3, %c0_38] : memref<7x128xf32, #tpu.memory_space<vmem>>, vector<1x128xf32>
    %84 = vector.broadcast %83 : vector<1x128xf32> to vector<16x128xf32>
    %85 = arith.addf %82, %84 : vector<16x128xf32>
    %cst_39 = arith.constant 0.000000e+00 : f32
    %86 = vector.broadcast %cst_39 : f32 to vector<16x128xf32>
    %87 = arith.cmpf oge, %85, %86 : vector<16x128xf32>
    %88 = vector.broadcast %69 : f32 to vector<16x128xf32>
    %89 = arith.mulf %88, %85 : vector<16x128xf32>
    %90 = arith.select %87, %85, %89 : vector<16x128xi1>, vector<16x128xf32>
    %91 = arith.truncf %90 : vector<16x128xf32> to vector<16x128xbf16>
    %c2_i32_40 = arith.constant 2 : i32
    %92 = tpu.dynamic_rotate %90 by %c2_i32_40 dim 0 : vector<16x128xf32>, i32 -> vector<16x128xf32>
    %93 = vector.broadcast %75 : vector<16x1xf32> to vector<16x128xf32>
    %94 = arith.mulf %92, %93 : vector<16x128xf32>
    %95 = arith.truncf %94 : vector<16x128xf32> to vector<16x128xbf16>
    %96 = tpu.concatenate %95, %91 in 1 : vector<16x128xbf16>, vector<16x128xbf16> -> vector<16x256xbf16>
    %c0_41 = arith.constant 0 : index
    %c0_42 = arith.constant 0 : index
    %97 = vector.load %arg6[%c0_41, %c0_42] : memref<256x128xbf16, #tpu.memory_space<vmem>>, vector<256x128xbf16>
    %cst_43 = arith.constant dense<0.000000e+00> : vector<16x128xf32>
    %98 = tpu.matmul %96, %97, %cst_43 {dimension_numbers = #tpu.dot_dimension_numbers<[1], [0], [0], [1], [0, 0, 1, 1], [], []>} : vector<16x256xbf16>, vector<256x128xbf16>, vector<16x128xf32> -> vector<16x128xf32>
    %c4 = arith.constant 4 : index
    %c0_44 = arith.constant 0 : index
    %99 = vector.load %arg8[%c4, %c0_44] : memref<7x128xf32, #tpu.memory_space<vmem>>, vector<1x128xf32>
    %100 = vector.broadcast %99 : vector<1x128xf32> to vector<16x128xf32>
    %101 = arith.addf %98, %100 : vector<16x128xf32>
    %cst_45 = arith.constant 0.000000e+00 : f32
    %102 = vector.broadcast %cst_45 : f32 to vector<16x128xf32>
    %103 = arith.cmpf oge, %101, %102 : vector<16x128xf32>
    %104 = vector.broadcast %70 : f32 to vector<16x128xf32>
    %105 = arith.mulf %104, %101 : vector<16x128xf32>
    %106 = arith.select %103, %101, %105 : vector<16x128xi1>, vector<16x128xf32>
    %c0_46 = arith.constant 0 : index
    %c0_47 = arith.constant 0 : index
    %107 = vector.load %arg7[%c0_46, %c0_47] : memref<128x128xbf16, #tpu.memory_space<vmem>>, vector<128x128xbf16>
    %cst_48 = arith.constant dense<0.000000e+00> : vector<16x128xf32>
    %108 = tpu.matmul %68, %107, %cst_48 {dimension_numbers = #tpu.dot_dimension_numbers<[1], [0], [0], [1], [0, 0, 1, 1], [], []>} : vector<16x128xbf16>, vector<128x128xbf16>, vector<16x128xf32> -> vector<16x128xf32>
    %c5 = arith.constant 5 : index
    %c0_49 = arith.constant 0 : index
    %109 = vector.load %arg8[%c5, %c0_49] : memref<7x128xf32, #tpu.memory_space<vmem>>, vector<1x128xf32>
    %110 = vector.broadcast %109 : vector<1x128xf32> to vector<16x128xf32>
    %111 = arith.addf %108, %110 : vector<16x128xf32>
    %112 = arith.addf %106, %111 : vector<16x128xf32>
    %cst_50 = arith.constant 0.000000e+00 : f32
    %113 = vector.broadcast %cst_50 : f32 to vector<16x128xf32>
    %114 = arith.cmpf oge, %112, %113 : vector<16x128xf32>
    %115 = vector.broadcast %71 : f32 to vector<16x128xf32>
    %116 = arith.mulf %115, %112 : vector<16x128xf32>
    %117 = arith.select %114, %112, %116 : vector<16x128xi1>, vector<16x128xf32>
    %118 = arith.truncf %117 : vector<16x128xf32> to vector<16x128xbf16>
    %c0_51 = arith.constant 0 : index
    %c0_52 = arith.constant 0 : index
    %119 = vector.load %arg10[%c0_51, %c0_52] : memref<1x16xbf16, #tpu.memory_space<vmem>>, vector<1x16xbf16>
    %cst_53 = arith.constant dense<0.000000e+00> : vector<1x128xf32>
    %120 = tpu.matmul %119, %118, %cst_53 {dimension_numbers = #tpu.dot_dimension_numbers<[1], [0], [0], [1], [0, 0, 1, 1], [], []>} : vector<1x16xbf16>, vector<16x128xbf16>, vector<1x128xf32> -> vector<1x128xf32>
    %cst_54 = arith.constant 6.250000e-02 : f32
    %121 = vector.broadcast %cst_54 : f32 to vector<1x128xf32>
    %122 = arith.mulf %120, %121 : vector<1x128xf32>
    %123 = arith.truncf %122 : vector<1x128xf32> to vector<1x128xbf16>
    %c0_55 = arith.constant 0 : index
    %c0_56 = arith.constant 0 : index
    %124 = vector.load %arg11[%c0_55, %c0_56] : memref<128x128xbf16, #tpu.memory_space<vmem>>, vector<128x128xbf16>
    %cst_57 = arith.constant dense<0.000000e+00> : vector<1x128xf32>
    %125 = tpu.matmul %123, %124, %cst_57 {dimension_numbers = #tpu.dot_dimension_numbers<[1], [0], [0], [1], [0, 0, 1, 1], [], []>} : vector<1x128xbf16>, vector<128x128xbf16>, vector<1x128xf32> -> vector<1x128xf32>
    %c6 = arith.constant 6 : index
    %c0_58 = arith.constant 0 : index
    %126 = vector.load %arg8[%c6, %c0_58] : memref<7x128xf32, #tpu.memory_space<vmem>>, vector<1x128xf32>
    %127 = arith.addf %125, %126 : vector<1x128xf32>
    %c0_59 = arith.constant 0 : index
    %c0_60 = arith.constant 0 : index
    %c0_61 = arith.constant 0 : index
    %128 = vector.load %arg12[%c0_59, %c0_60, %c0_61] : memref<1x1x128xf32, #tpu.memory_space<vmem>>, vector<1x1x128xf32>
    %129 = vector.shape_cast %128 : vector<1x1x128xf32> to vector<1x128xf32>
    %130 = vector.shape_cast %127 : vector<1x128xf32> to vector<1x1x128xf32>
    tpu.vector_store %arg12[%c0_59, %c0_60, %c0_61], %130 {strides = array<i32>} : memref<1x1x128xf32, #tpu.memory_space<vmem>>, vector<1x1x128xf32>,
    return
  }
  func.func @transform_0(%arg0: i32) -> (i32, i32) {
    %c0_i32 = arith.constant 0 : i32
    %c0_i32_0 = arith.constant 0 : i32
    return %arg0, %c0_i32 : i32, i32
  }
  func.func @transform_1(%arg0: i32) -> (i32, i32) {
    %c0_i32 = arith.constant 0 : i32
    %c0_i32_0 = arith.constant 0 : i32
    %c0_i32_1 = arith.constant 0 : i32
    return %c0_i32, %c0_i32_0 : i32, i32
  }
  func.func @transform_2(%arg0: i32) -> (i32, i32) {
    %c0_i32 = arith.constant 0 : i32
    %c0_i32_0 = arith.constant 0 : i32
    %c0_i32_1 = arith.constant 0 : i32
    return %c0_i32, %c0_i32_0 : i32, i32
  }
  func.func @transform_3(%arg0: i32) -> (i32, i32) {
    %c0_i32 = arith.constant 0 : i32
    %c0_i32_0 = arith.constant 0 : i32
    %c0_i32_1 = arith.constant 0 : i32
    return %c0_i32, %c0_i32_0 : i32, i32
  }
  func.func @transform_4(%arg0: i32) -> (i32, i32) {
    %c0_i32 = arith.constant 0 : i32
    %c0_i32_0 = arith.constant 0 : i32
    %c0_i32_1 = arith.constant 0 : i32
    return %c0_i32, %c0_i32_0 : i32, i32
  }
  func.func @transform_5(%arg0: i32) -> (i32, i32) {
    %c0_i32 = arith.constant 0 : i32
    %c0_i32_0 = arith.constant 0 : i32
    %c0_i32_1 = arith.constant 0 : i32
    return %c0_i32, %c0_i32_0 : i32, i32
  }
  func.func @transform_6(%arg0: i32) -> (i32, i32) {
    %c0_i32 = arith.constant 0 : i32
    %c0_i32_0 = arith.constant 0 : i32
    %c0_i32_1 = arith.constant 0 : i32
    return %c0_i32, %c0_i32_0 : i32, i32
  }
  func.func @transform_7(%arg0: i32) -> (i32, i32) {
    %c0_i32 = arith.constant 0 : i32
    %c0_i32_0 = arith.constant 0 : i32
    %c0_i32_1 = arith.constant 0 : i32
    return %c0_i32, %c0_i32_0 : i32, i32
  }
  func.func @transform_8(%arg0: i32) -> (i32, i32) {
    %c0_i32 = arith.constant 0 : i32
    %c0_i32_0 = arith.constant 0 : i32
    %c0_i32_1 = arith.constant 0 : i32
    return %c0_i32, %c0_i32_0 : i32, i32
  }
  func.func @transform_9(%arg0: i32) -> (i32, i32) {
    %c0_i32 = arith.constant 0 : i32
    %c0_i32_0 = arith.constant 0 : i32
    %c0_i32_1 = arith.constant 0 : i32
    return %c0_i32, %c0_i32_0 : i32, i32
  }
  func.func @transform_10(%arg0: i32) -> (i32, i32) {
    %c0_i32 = arith.constant 0 : i32
    %c0_i32_0 = arith.constant 0 : i32
    %c0_i32_1 = arith.constant 0 : i32
    return %c0_i32, %c0_i32_0 : i32, i32
  }
  func.func @transform_11(%arg0: i32) -> (i32, i32, i32) {
    %c0_i32 = arith.constant 0 : i32
    %c0_i32_0 = arith.constant 0 : i32
    %c0_i32_1 = arith.constant 0 : i32
    return %arg0, %c0_i32, %c0_i32_0 : i32, i32, i32
  }
}

module attributes {stable_mosaic.version = 11 : i64} {
  func.func @kernel(%arg0: i32, %arg1: memref<16x128xf32, #tpu.memory_space<vmem>>, %arg2: memref<256x128xbf16, #tpu.memory_space<vmem>>, %arg3: memref<256x128xbf16, #tpu.memory_space<vmem>>, %arg4: memref<128x128xbf16, #tpu.memory_space<vmem>>, %arg5: memref<256x128xbf16, #tpu.memory_space<vmem>>, %arg6: memref<256x128xbf16, #tpu.memory_space<vmem>>, %arg7: memref<128x128xbf16, #tpu.memory_space<vmem>>, %arg8: memref<7x128xf32, #tpu.memory_space<vmem>>, %arg9: memref<2x3xf32, #tpu.memory_space<smem>>, %arg10: memref<1x16xbf16, #tpu.memory_space<vmem>>, %arg11: memref<128x128xbf16, #tpu.memory_space<vmem>>, %arg12: memref<1x1x128xf32, #tpu.memory_space<vmem>>) attributes {dimension_semantics = [#tpu.dimension_semantics<parallel>], iteration_bounds = array<i64: 2>, scalar_prefetch = 0 : i64, scratch_operands = 0 : i64, tpu.core_type = #tpu.core_type<tc>, window_params = [{transform_indices = @transform_0, window_bounds = array<i64: 16, 128>}, {pipeline_mode = #tpu.pipeline_mode<synchronous>, transform_indices = @transform_1, window_bounds = array<i64: 256, 128>}, {pipeline_mode = #tpu.pipeline_mode<synchronous>, transform_indices = @transform_2, window_bounds = array<i64: 256, 128>}, {pipeline_mode = #tpu.pipeline_mode<synchronous>, transform_indices = @transform_3, window_bounds = array<i64: 128, 128>}, {pipeline_mode = #tpu.pipeline_mode<synchronous>, transform_indices = @transform_4, window_bounds = array<i64: 256, 128>}, {pipeline_mode = #tpu.pipeline_mode<synchronous>, transform_indices = @transform_5, window_bounds = array<i64: 256, 128>}, {pipeline_mode = #tpu.pipeline_mode<synchronous>, transform_indices = @transform_6, window_bounds = array<i64: 128, 128>}, {pipeline_mode = #tpu.pipeline_mode<synchronous>, transform_indices = @transform_7, window_bounds = array<i64: 7, 128>}, {transform_indices = @transform_8, window_bounds = array<i64: 2, 3>}, {pipeline_mode = #tpu.pipeline_mode<synchronous>, transform_indices = @transform_9, window_bounds = array<i64: 1, 16>}, {pipeline_mode = #tpu.pipeline_mode<synchronous>, transform_indices = @transform_10, window_bounds = array<i64: 128, 128>}, {transform_indices = @transform_11, window_bounds = array<i64: 1, 1, 128>}]} {
    %0 = tpu.iota {dimensions = array<i32: 0>} : vector<16x1xi32>
    %c16_i32 = arith.constant 16 : i32
    %c0_i32 = arith.constant 0 : i32
    %1 = arith.cmpi eq, %c16_i32, %c0_i32 : i32
    %c1_i32 = arith.constant 1 : i32
    %2 = arith.select %1, %c1_i32, %c16_i32 : i32
    %3 = vector.broadcast %2 : i32 to vector<16x1xi32>
    %4 = arith.remsi %0, %3 : vector<16x1xi32>
    %c0_i32_0 = arith.constant 0 : i32
    %5 = vector.broadcast %c0_i32_0 : i32 to vector<16x1xi32>
    %6 = arith.cmpi ne, %4, %5 : vector<16x1xi32>
    %c0_i32_1 = arith.constant 0 : i32
    %7 = vector.broadcast %c0_i32_1 : i32 to vector<16x1xi32>
    %8 = arith.cmpi slt, %4, %7 : vector<16x1xi32>
    %c0_i32_2 = arith.constant 0 : i32
    %9 = arith.cmpi slt, %2, %c0_i32_2 : i32
    %10 = vector.broadcast %9 : i1 to vector<16x1xi1>
    %11 = vector.broadcast %10 : vector<16x1xi1> to vector<16x1xi1>
    %12 = arith.xori %8, %11 : vector<16x1xi1>
    %13 = arith.andi %12, %6 : vector<16x1xi1>
    %14 = vector.broadcast %2 : i32 to vector<16x1xi32>
    %15 = arith.addi %4, %14 : vector<16x1xi32>
    %16 = arith.select %13, %15, %4 : vector<16x1xi1>, vector<16x1xi32>
    %c0 = arith.constant 0 : index
    %c0_3 = arith.constant 0 : index
    %17 = vector.load %arg1[%c0, %c0_3] : memref<16x128xf32, #tpu.memory_space<vmem>>, vector<16x128xf32>
    %18 = arith.truncf %17 : vector<16x128xf32> to vector<16x128xbf16>
    %c0_4 = arith.constant 0 : index
    %c0_5 = arith.constant 0 : index
    %19 = memref.load %arg9[%c0_4, %c0_5] : memref<2x3xf32, #tpu.memory_space<smem>>
    %c0_6 = arith.constant 0 : index
    %c1 = arith.constant 1 : index
    %20 = memref.load %arg9[%c0_6, %c1] : memref<2x3xf32, #tpu.memory_space<smem>>
    %c0_7 = arith.constant 0 : index
    %c2 = arith.constant 2 : index
    %21 = memref.load %arg9[%c0_7, %c2] : memref<2x3xf32, #tpu.memory_space<smem>>
    %c1_i32_8 = arith.constant 1 : i32
    %22 = vector.broadcast %c1_i32_8 : i32 to vector<16x1xi32>
    %23 = arith.cmpi sge, %16, %22 : vector<16x1xi32>
    %24 = arith.extui %23 : vector<16x1xi1> to vector<16x1xi32>
    %25 = arith.sitofp %24 : vector<16x1xi32> to vector<16x1xf32>
    %c1_i32_9 = arith.constant 1 : i32
    %26 = tpu.dynamic_rotate %17 by %c1_i32_9 dim 0 : vector<16x128xf32>, i32 -> vector<16x128xf32>
    %27 = vector.broadcast %25 : vector<16x1xf32> to vector<16x128xf32>
    %28 = arith.mulf %26, %27 : vector<16x128xf32>
    %29 = arith.truncf %28 : vector<16x128xf32> to vector<16x128xbf16>
    %30 = tpu.concatenate %29, %18 in 1 : vector<16x128xbf16>, vector<16x128xbf16> -> vector<16x256xbf16>
    %c0_10 = arith.constant 0 : index
    %c0_11 = arith.constant 0 : index
    %31 = vector.load %arg2[%c0_10, %c0_11] : memref<256x128xbf16, #tpu.memory_space<vmem>>, vector<256x128xbf16>
    %cst = arith.constant dense<0.000000e+00> : vector<16x128xf32>
    %32 = tpu.matmul %30, %31, %cst {dimension_numbers = #tpu.dot_dimension_numbers<[1], [0], [0], [1], [0, 0, 1, 1], [], []>} : vector<16x256xbf16>, vector<256x128xbf16>, vector<16x128xf32> -> vector<16x128xf32>
    %c0_12 = arith.constant 0 : index
    %c0_13 = arith.constant 0 : index
    %33 = vector.load %arg8[%c0_12, %c0_13] : memref<7x128xf32, #tpu.memory_space<vmem>>, vector<1x128xf32>
    %34 = vector.broadcast %33 : vector<1x128xf32> to vector<16x128xf32>
    %35 = arith.addf %32, %34 : vector<16x128xf32>
    %cst_14 = arith.constant 0.000000e+00 : f32
    %36 = vector.broadcast %cst_14 : f32 to vector<16x128xf32>
    %37 = arith.cmpf oge, %35, %36 : vector<16x128xf32>
    %38 = vector.broadcast %19 : f32 to vector<16x128xf32>
    %39 = arith.mulf %38, %35 : vector<16x128xf32>
    %40 = arith.select %37, %35, %39 : vector<16x128xi1>, vector<16x128xf32>
    %41 = arith.truncf %40 : vector<16x128xf32> to vector<16x128xbf16>
    %c1_i32_15 = arith.constant 1 : i32
    %42 = tpu.dynamic_rotate %40 by %c1_i32_15 dim 0 : vector<16x128xf32>, i32 -> vector<16x128xf32>
    %43 = vector.broadcast %25 : vector<16x1xf32> to vector<16x128xf32>
    %44 = arith.mulf %42, %43 : vector<16x128xf32>
    %45 = arith.truncf %44 : vector<16x128xf32> to vector<16x128xbf16>
    %46 = tpu.concatenate %45, %41 in 1 : vector<16x128xbf16>, vector<16x128xbf16> -> vector<16x256xbf16>
    %c0_16 = arith.constant 0 : index
    %c0_17 = arith.constant 0 : index
    %47 = vector.load %arg3[%c0_16, %c0_17] : memref<256x128xbf16, #tpu.memory_space<vmem>>, vector<256x128xbf16>
    %cst_18 = arith.constant dense<0.000000e+00> : vector<16x128xf32>
    %48 = tpu.matmul %46, %47, %cst_18 {dimension_numbers = #tpu.dot_dimension_numbers<[1], [0], [0], [1], [0, 0, 1, 1], [], []>} : vector<16x256xbf16>, vector<256x128xbf16>, vector<16x128xf32> -> vector<16x128xf32>
    %c1_19 = arith.constant 1 : index
    %c0_20 = arith.constant 0 : index
    %49 = vector.load %arg8[%c1_19, %c0_20] : memref<7x128xf32, #tpu.memory_space<vmem>>, vector<1x128xf32>
    %50 = vector.broadcast %49 : vector<1x128xf32> to vector<16x128xf32>
    %51 = arith.addf %48, %50 : vector<16x128xf32>
    %cst_21 = arith.constant 0.000000e+00 : f32
    %52 = vector.broadcast %cst_21 : f32 to vector<16x128xf32>
    %53 = arith.cmpf oge, %51, %52 : vector<16x128xf32>
    %54 = vector.broadcast %20 : f32 to vector<16x128xf32>
    %55 = arith.mulf %54, %51 : vector<16x128xf32>
    %56 = arith.select %53, %51, %55 : vector<16x128xi1>, vector<16x128xf32>
    %c0_22 = arith.constant 0 : index
    %c0_23 = arith.constant 0 : index
    %57 = vector.load %arg4[%c0_22, %c0_23] : memref<128x128xbf16, #tpu.memory_space<vmem>>, vector<128x128xbf16>
    %cst_24 = arith.constant dense<0.000000e+00> : vector<16x128xf32>
    %58 = tpu.matmul %18, %57, %cst_24 {dimension_numbers = #tpu.dot_dimension_numbers<[1], [0], [0], [1], [0, 0, 1, 1], [], []>} : vector<16x128xbf16>, vector<128x128xbf16>, vector<16x128xf32> -> vector<16x128xf32>
    %c2_25 = arith.constant 2 : index
    %c0_26 = arith.constant 0 : index
    %59 = vector.load %arg8[%c2_25, %c0_26] : memref<7x128xf32, #tpu.memory_space<vmem>>, vector<1x128xf32>
    %60 = vector.broadcast %59 : vector<1x128xf32> to vector<16x128xf32>
    %61 = arith.addf %58, %60 : vector<16x128xf32>
    %62 = arith.addf %56, %61 : vector<16x128xf32>
    %cst_27 = arith.constant 0.000000e+00 : f32
    %63 = vector.broadcast %cst_27 : f32 to vector<16x128xf32>
    %64 = arith.cmpf oge, %62, %63 : vector<16x128xf32>
    %65 = vector.broadcast %21 : f32 to vector<16x128xf32>
    %66 = arith.mulf %65, %62 : vector<16x128xf32>
    %67 = arith.select %64, %62, %66 : vector<16x128xi1>, vector<16x128xf32>
    %68 = arith.truncf %67 : vector<16x128xf32> to vector<16x128xbf16>
    %c1_28 = arith.constant 1 : index
    %c0_29 = arith.constant 0 : index
    %69 = memref.load %arg9[%c1_28, %c0_29] : memref<2x3xf32, #tpu.memory_space<smem>>
    %c1_30 = arith.constant 1 : index
    %c1_31 = arith.constant 1 : index
    %70 = memref.load %arg9[%c1_30, %c1_31] : memref<2x3xf32, #tpu.memory_space<smem>>
    %c1_32 = arith.constant 1 : index
    %c2_33 = arith.constant 2 : index
    %71 = memref.load %arg9[%c1_32, %c2_33] : memref<2x3xf32, #tpu.memory_space<smem>>
    %c2_i32 = arith.constant 2 : i32
    %72 = vector.broadcast %c2_i32 : i32 to vector<16x1xi32>
    %73 = arith.cmpi sge, %16, %72 : vector<16x1xi32>
    %74 = arith.extui %73 : vector<16x1xi1> to vector<16x1xi32>
    %75 = arith.sitofp %74 : vector<16x1xi32> to vector<16x1xf32>
    %c2_i32_34 = arith.constant 2 : i32
    %76 = tpu.dynamic_rotate %67 by %c2_i32_34 dim 0 : vector<16x128xf32>, i32 -> vector<16x128xf32>
    %77 = vector.broadcast %75 : vector<16x1xf32> to vector<16x128xf32>
    %78 = arith.mulf %76, %77 : vector<16x128xf32>
    %79 = arith.truncf %78 : vector<16x128xf32> to vector<16x128xbf16>
    %80 = tpu.concatenate %79, %68 in 1 : vector<16x128xbf16>, vector<16x128xbf16> -> vector<16x256xbf16>
    %c0_35 = arith.constant 0 : index
    %c0_36 = arith.constant 0 : index
    %81 = vector.load %arg5[%c0_35, %c0_36] : memref<256x128xbf16, #tpu.memory_space<vmem>>, vector<256x128xbf16>
    %cst_37 = arith.constant dense<0.000000e+00> : vector<16x128xf32>
    %82 = tpu.matmul %80, %81, %cst_37 {dimension_numbers = #tpu.dot_dimension_numbers<[1], [0], [0], [1], [0, 0, 1, 1], [], []>} : vector<16x256xbf16>, vector<256x128xbf16>, vector<16x128xf32> -> vector<16x128xf32>
    %c3 = arith.constant 3 : index
    %c0_38 = arith.constant 0 : index
    %83 = vector.load %arg8[%c3, %c0_38] : memref<7x128xf32, #tpu.memory_space<vmem>>, vector<1x128xf32>
    %84 = vector.broadcast %83 : vector<1x128xf32> to vector<16x128xf32>
    %85 = arith.addf %82, %84 : vector<16x128xf32>
    %cst_39 = arith.constant 0.000000e+00 : f32
    %86 = vector.broadcast %cst_39 : f32 to vector<16x128xf32>
    %87 = arith.cmpf oge, %85, %86 : vector<16x128xf32>
    %88 = vector.broadcast %69 : f32 to vector<16x128xf32>
    %89 = arith.mulf %88, %85 : vector<16x128xf32>
    %90 = arith.select %87, %85, %89 : vector<16x128xi1>, vector<16x128xf32>
    %91 = arith.truncf %90 : vector<16x128xf32> to vector<16x128xbf16>
    %c2_i32_40 = arith.constant 2 : i32
    %92 = tpu.dynamic_rotate %90 by %c2_i32_40 dim 0 : vector<16x128xf32>, i32 -> vector<16x128xf32>
    %93 = vector.broadcast %75 : vector<16x1xf32> to vector<16x128xf32>
    %94 = arith.mulf %92, %93 : vector<16x128xf32>
    %95 = arith.truncf %94 : vector<16x128xf32> to vector<16x128xbf16>
    %96 = tpu.concatenate %95, %91 in 1 : vector<16x128xbf16>, vector<16x128xbf16> -> vector<16x256xbf16>
    %c0_41 = arith.constant 0 : index
    %c0_42 = arith.constant 0 : index
    %97 = vector.load %arg6[%c0_41, %c0_42] : memref<256x128xbf16, #tpu.memory_space<vmem>>, vector<256x128xbf16>
    %cst_43 = arith.constant dense<0.000000e+00> : vector<16x128xf32>
    %98 = tpu.matmul %96, %97, %cst_43 {dimension_numbers = #tpu.dot_dimension_numbers<[1], [0], [0], [1], [0, 0, 1, 1], [], []>} : vector<16x256xbf16>, vector<256x128xbf16>, vector<16x128xf32> -> vector<16x128xf32>
    %c4 = arith.constant 4 : index
    %c0_44 = arith.constant 0 : index
    %99 = vector.load %arg8[%c4, %c0_44] : memref<7x128xf32, #tpu.memory_space<vmem>>, vector<1x128xf32>
    %100 = vector.broadcast %99 : vector<1x128xf32> to vector<16x128xf32>
    %101 = arith.addf %98, %100 : vector<16x128xf32>
    %cst_45 = arith.constant 0.000000e+00 : f32
    %102 = vector.broadcast %cst_45 : f32 to vector<16x128xf32>
    %103 = arith.cmpf oge, %101, %102 : vector<16x128xf32>
    %104 = vector.broadcast %70 : f32 to vector<16x128xf32>
    %105 = arith.mulf %104, %101 : vector<16x128xf32>
    %106 = arith.select %103, %101, %105 : vector<16x128xi1>, vector<16x128xf32>
    %c0_46 = arith.constant 0 : index
    %c0_47 = arith.constant 0 : index
    %107 = vector.load %arg7[%c0_46, %c0_47] : memref<128x128xbf16, #tpu.memory_space<vmem>>, vector<128x128xbf16>
    %cst_48 = arith.constant dense<0.000000e+00> : vector<16x128xf32>
    %108 = tpu.matmul %68, %107, %cst_48 {dimension_numbers = #tpu.dot_dimension_numbers<[1], [0], [0], [1], [0, 0, 1, 1], [], []>} : vector<16x128xbf16>, vector<128x128xbf16>, vector<16x128xf32> -> vector<16x128xf32>
    %c5 = arith.constant 5 : index
    %c0_49 = arith.constant 0 : index
    %109 = vector.load %arg8[%c5, %c0_49] : memref<7x128xf32, #tpu.memory_space<vmem>>, vector<1x128xf32>
    %110 = vector.broadcast %109 : vector<1x128xf32> to vector<16x128xf32>
    %111 = arith.addf %108, %110 : vector<16x128xf32>
    %112 = arith.addf %106, %111 : vector<16x128xf32>
    %cst_50 = arith.constant 0.000000e+00 : f32
    %113 = vector.broadcast %cst_50 : f32 to vector<16x128xf32>
    %114 = arith.cmpf oge, %112, %113 : vector<16x128xf32>
    %115 = vector.broadcast %71 : f32 to vector<16x128xf32>
    %116 = arith.mulf %115, %112 : vector<16x128xf32>
    %117 = arith.select %114, %112, %116 : vector<16x128xi1>, vector<16x128xf32>
    %118 = arith.truncf %117 : vector<16x128xf32> to vector<16x128xbf16>
    %c0_51 = arith.constant 0 : index
    %c0_52 = arith.constant 0 : index
    %119 = vector.load %arg10[%c0_51, %c0_52] : memref<1x16xbf16, #tpu.memory_space<vmem>>, vector<1x16xbf16>
    %cst_53 = arith.constant dense<0.000000e+00> : vector<1x128xf32>
    %120 = tpu.matmul %119, %118, %cst_53 {dimension_numbers = #tpu.dot_dimension_numbers<[1], [0], [0], [1], [0, 0, 1, 1], [], []>} : vector<1x16xbf16>, vector<16x128xbf16>, vector<1x128xf32> -> vector<1x128xf32>
    %cst_54 = arith.constant 6.250000e-02 : f32
    %121 = vector.broadcast %cst_54 : f32 to vector<1x128xf32>
    %122 = arith.mulf %120, %121 : vector<1x128xf32>
    %123 = arith.truncf %122 : vector<1x128xf32> to vector<1x128xbf16>
    %c0_55 = arith.constant 0 : index
    %c0_56 = arith.constant 0 : index
    %124 = vector.load %arg11[%c0_55, %c0_56] : memref<128x128xbf16, #tpu.memory_space<vmem>>, vector<128x128xbf16>
    %cst_57 = arith.constant dense<0.000000e+00> : vector<1x128xf32>
    %125 = tpu.matmul %123, %124, %cst_57 {dimension_numbers = #tpu.dot_dimension_numbers<[1], [0], [0], [1], [0, 0, 1, 1], [], []>} : vector<1x128xbf16>, vector<128x128xbf16>, vector<1x128xf32> -> vector<1x128xf32>
    %c6 = arith.constant 6 : index
    %c0_58 = arith.constant 0 : index
    %126 = vector.load %arg8[%c6, %c0_58] : memref<7x128xf32, #tpu.memory_space<vmem>>, vector<1x128xf32>
    %127 = arith.addf %125, %126 : vector<1x128xf32>
    %c0_59 = arith.constant 0 : index
    %c0_60 = arith.constant 0 : index
    %c0_61 = arith.constant 0 : index
    %128 = vector.load %arg12[%c0_59, %c0_60, %c0_61] : memref<1x1x128xf32, #tpu.memory_space<vmem>>, vector<1x1x128xf32>
    %129 = vector.shape_cast %128 : vector<1x1x128xf32> to vector<1x128xf32>
    %130 = vector.shape_cast %127 : vector<1x128xf32> to vector<1x1x128xf32>
    tpu.vector_store %arg12[%c0_59, %c0_60, %c0_61], %130 {strides = array<i32>} : memref<1x1x128xf32, #tpu.memory_space<vmem>>, vector<1x1x128xf32>,
    return
  }
  func.func @transform_0(%arg0: i32) -> (i32, i32) {
    %c0_i32 = arith.constant 0 : i32
    %c0_i32_0 = arith.constant 0 : i32
    return %arg0, %c0_i32 : i32, i32
  }
  func.func @transform_1(%arg0: i32) -> (i32, i32) {
    %c0_i32 = arith.constant 0 : i32
    %c0_i32_0 = arith.constant 0 : i32
    %c0_i32_1 = arith.constant 0 : i32
    return %c0_i32, %c0_i32_0 : i32, i32
  }
  func.func @transform_2(%arg0: i32) -> (i32, i32) {
    %c0_i32 = arith.constant 0 : i32
    %c0_i32_0 = arith.constant 0 : i32
    %c0_i32_1 = arith.constant 0 : i32
    return %c0_i32, %c0_i32_0 : i32, i32
  }
  func.func @transform_3(%arg0: i32) -> (i32, i32) {
    %c0_i32 = arith.constant 0 : i32
    %c0_i32_0 = arith.constant 0 : i32
    %c0_i32_1 = arith.constant 0 : i32
    return %c0_i32, %c0_i32_0 : i32, i32
  }
  func.func @transform_4(%arg0: i32) -> (i32, i32) {
    %c0_i32 = arith.constant 0 : i32
    %c0_i32_0 = arith.constant 0 : i32
    %c0_i32_1 = arith.constant 0 : i32
    return %c0_i32, %c0_i32_0 : i32, i32
  }
  func.func @transform_5(%arg0: i32) -> (i32, i32) {
    %c0_i32 = arith.constant 0 : i32
    %c0_i32_0 = arith.constant 0 : i32
    %c0_i32_1 = arith.constant 0 : i32
    return %c0_i32, %c0_i32_0 : i32, i32
  }
  func.func @transform_6(%arg0: i32) -> (i32, i32) {
    %c0_i32 = arith.constant 0 : i32
    %c0_i32_0 = arith.constant 0 : i32
    %c0_i32_1 = arith.constant 0 : i32
    return %c0_i32, %c0_i32_0 : i32, i32
  }
  func.func @transform_7(%arg0: i32) -> (i32, i32) {
    %c0_i32 = arith.constant 0 : i32
    %c0_i32_0 = arith.constant 0 : i32
    %c0_i32_1 = arith.constant 0 : i32
    return %c0_i32, %c0_i32_0 : i32, i32
  }
  func.func @transform_8(%arg0: i32) -> (i32, i32) {
    %c0_i32 = arith.constant 0 : i32
    %c0_i32_0 = arith.constant 0 : i32
    %c0_i32_1 = arith.constant 0 : i32
    return %c0_i32, %c0_i32_0 : i32, i32
  }
  func.func @transform_9(%arg0: i32) -> (i32, i32) {
    %c0_i32 = arith.constant 0 : i32
    %c0_i32_0 = arith.constant 0 : i32
    %c0_i32_1 = arith.constant 0 : i32
    return %c0_i32, %c0_i32_0 : i32, i32
  }
  func.func @transform_10(%arg0: i32) -> (i32, i32) {
    %c0_i32 = arith.constant 0 : i32
    %c0_i32_0 = arith.constant 0 : i32
    %c0_i32_1 = arith.constant 0 : i32
    return %c0_i32, %c0_i32_0 : i32, i32
  }
  func.func @transform_11(%arg0: i32) -> (i32, i32, i32) {
    %c0_i32 = arith.constant 0 : i32
    %c0_i32_0 = arith.constant 0 : i32
    %c0_i32_1 = arith.constant 0 : i32
    return %arg0, %c0_i32, %c0_i32_0 : i32, i32, i32
  }
}

</mosaic_0001>

<bundles_post_ra>
// kernel: tpu_custom_call.1
= control target key start
LH: loop header
LB: loop body
LE: loop exit
PB: predicated region body
PF: predicated region fallthrough
CT: control target
= control target key end

     0   :  { %s3145_s0 = inlined_call_operand.hbm [shape: f32[32,128], index: 0, kind: input, shape index: {}]   ;;  %s3146_s1 = inlined_call_operand.hbm [shape: bf16[256,128], index: 1, kind: input, shape index: {}]   ;;  %s3147_s2 = inlined_call_operand.hbm [shape: bf16[256,128], index: 2, kind: input, shape index: {}]   ;;  %s3148_s3 = inlined_call_operand.hbm [shape: bf16[128,128], index: 3, kind: input, shape index: {}]   ;;  %s3149_s4 = inlined_call_operand.hbm [shape: bf16[256,128], index: 4, kind: input, shape index: {}]   ;;  %s3150_s5 = inlined_call_operand.hbm [shape: bf16[256,128], index: 5, kind: input, shape index: {}]   ;;  %s3151_s6 = inlined_call_operand.hbm [shape: bf16[128,128], index: 6, kind: input, shape index: {}]   ;;  %s3152_s7 = inlined_call_operand.hbm [shape: f32[7,128], index: 7, kind: input, shape index: {}]   ;;  %s3153_s8 = inlined_call_operand.vmem [shape: f32[2,3], index: 8, kind: input, shape index: {}]   ;;  %s3154_s9 = inlined_call_operand.vmem [shape: bf16[1,16], index: 9, kind: input, shape index: {}]   ;;  %s3155_s10 = inlined_call_operand.hbm [shape: bf16[128,128], index: 10, kind: input, shape index: {}]   ;;  %s3156_s11 = inlined_call_operand.hbm [shape: f32[2,1,128], index: 11, kind: output, shape index: {}]  }
   0x1   :  { %3157 = sst [smem:[#allocation28_spill]] %s3146_s1 }
   0x2   :  { %3158 = sst [smem:[#allocation29_spill]] %s3147_s2 }
   0x3   :  { %3159 = sst [smem:[#allocation30_spill]] %s3148_s3 }
   0x4   :  { %3160 = sst [smem:[#allocation31_spill]] %s3149_s4 }
   0x5   :  { %3161 = sst [smem:[#allocation32_spill]] %s3150_s5 }
   0x6   :  { %3162 = sst [smem:[#allocation33_spill]] %s3151_s6 }
   0x7   :  { %16 = vsyncpa [#allocation3], 0 }
   0x8   :  { %18 = vsyncpa [#allocation3 + $0x1], 0 }
   0x9   :  { %19 = vsyncpa [#allocation7], 0 }
   0xa   :  { %20 = vsyncpa [#allocation10], 0 }
   0xb   :  { %21 = vsyncpa [#allocation13], 0 }
   0xc   :  { %22 = vsyncpa [#allocation16], 0 }
   0xd   :  { %23 = vsyncpa [#allocation5], 0 }
   0xe   :  { %24 = vsyncpa [#allocation4], 0 }
   0xf   :  { %26 = vsyncpa [#allocation4 + $0x1], 0  ;;  %s2870_s17 = smov 0   ;;  %s2872_s18 = smov 0  }
  0x10   :  { %s2874_s19 = smov 0   ;;  %s2876_s20 = smov 0  }
  0x11 LB: > { %s3163_s1 = sld [smem:[#allocation28_spill]]  ;;  %s2894_s24 = sadd.s32 4294967295, %s2794_s20   ;;  %s2794_s20 = sphi %s2876_s20, %s3180_s20   ;;  %s2790_s19 = sphi %s2874_s19, %s3179_s19   ;;  %s2786_s18 = sphi %s2872_s18, %s3178_s18   ;;  %s2782_s17 = sphi %s2870_s17, %s3177_s17  }
  0x12   : > { %p1795_p0 = scmp.ge.s32.totalorder %s2794_s20, 1  ;;  %p53_p1 = scmp.eq.s32.totalorder %s2894_s24, 0 }
  0x13   : > { %p299_p2 = scmp.lt.s32.totalorder %s2794_s20, 3  ;;  %s2796_s26 = smov [#allocation6]  }
  0x14   : > { %s312_s27 = sshll.u32 %s2796_s26, 4  ;;  %s3165_s3 = sld [smem:[#allocation30_spill]]  ;;  %s313_s27 = int_to_ptr.vmem [resolvable:$true] %s312_s27 }
  0x15   : > { %p2899_p3 = pnand %p1795_p0, %p299_p2  ;;  %s3167_s5 = sld [smem:[#allocation32_spill]] }
  0x16   : > { %s2797_s16 = smov [#allocation9]   ;;  %s2798_s22 = smov 64  }
  0x17   : > { %s310_s23 = sshll.u32 %s3163_s1, 4  ;;  %p2311_p4 = pneg %p2899_p3  ;;  %s311_s23 = int_to_ptr.hbm [resolvable:$true] %s310_s23 }
  0x18   : > { %s340_s21 = sshll.u32 %s2797_s16, 4  ;;  %s2799_s26 = smov 4   ;;  %s341_s21 = int_to_ptr.vmem [resolvable:$true] %s340_s21 }
  0x19   : > { %p2911_p6 = pnand %p2311_p4, %p53_p1  ;;  %s395_s13 = sshll.u32 %s3152_s7, 4  ;;  %s396_s13 = int_to_ptr.hbm [resolvable:$true] %s395_s13 }
  0x1a   : > { %s338_s30 = sshll.u32 %s3165_s3, 4  ;;  %s2800_s14 = smov [#allocation12]   ;;  %s339_s30 = int_to_ptr.hbm [resolvable:$true] %s338_s30 }
  0x1b   : > { %s366_s15 = sshll.u32 %s3167_s5, 4  ;;  %s368_s16 = sshll.u32 %s2800_s14, 4  ;;  %s367_s15 = int_to_ptr.hbm [resolvable:$true] %s366_s15  ;;  %s369_s16 = int_to_ptr.vmem [resolvable:$true] %s368_s16 }
  0x1c   : > { %2314 = dma.hbm_to_vmem [thread:$0]  (!%p2911_p6), %s311_s23, 2048, %s313_s27, [#allocation7], %s2798_s22, %s2798_s22, %s2799_s26  }
  0x1d   : > { %2320 = dma.hbm_to_vmem [thread:$0]  (!%p2911_p6), %s339_s30, 1024, %s341_s21, [#allocation10], %s2798_s22, %s2798_s22, %s2799_s26  }
  0x1e   : > { %2326 = dma.hbm_to_vmem [thread:$0]  (!%p2911_p6), %s367_s15, 2048, %s369_s16, [#allocation13], %s2798_s22, %s2798_s22, %s2799_s26  }
  0x1f   : > { %s2801_s23 = smov [#allocation15]   ;;  %s3168_s2 = sld [smem:[#allocation29_spill]] }
  0x20   : > { %s397_s27 = sshll.u32 %s2801_s23, 4  ;;  %s3169_s4 = sld [smem:[#allocation31_spill]]  ;;  %s398_s27 = int_to_ptr.vmem [resolvable:$true] %s397_s27 }
  0x21   : > { %2332 = dma.hbm_to_vmem [thread:$0]  (!%p2911_p6), %s396_s13, 128, %s398_s27, [#allocation16]  }
  0x22   : > { %s2802_s14 = smov [#allocation8]   ;;  %s2803_s1 = smov [#allocation11]  }
  0x23   : > { %s326_s5 = sshll.u32 %s2802_s14, 4  ;;  %s354_s3 = sshll.u32 %s2803_s1, 4  ;;  %s327_s5 = int_to_ptr.vmem [resolvable:$true] %s326_s5  ;;  %s355_s3 = int_to_ptr.vmem [resolvable:$true] %s354_s3 }
  0x24   : > { %s3170_s6 = sld [smem:[#allocation33_spill]]  ;;  %s2805_s28 = smov [#allocation17]  }
  0x25   : > { %s324_s30 = sshll.u32 %s3168_s2, 4  ;;  %s419_s1 = sshll.u32 %s3155_s10, 4  ;;  %s325_s30 = int_to_ptr.hbm [resolvable:$true] %s324_s30  ;;  %s420_s1 = int_to_ptr.hbm [resolvable:$true] %s419_s1 }
  0x26   : > { %s352_s29 = sshll.u32 %s3169_s4, 4  ;;  %s1794_s16 = sadd.s32 4294967294, %s2794_s20   ;;  %s353_s29 = int_to_ptr.hbm [resolvable:$true] %s352_s29 }
  0x27   : > { %2317 = dma.hbm_to_vmem [thread:$0]  (!%p2911_p6), %s325_s30, 2048, %s327_s5, [#allocation7], %s2798_s22, %s2798_s22, %s2799_s26  }
  0x28   : > { %2323 = dma.hbm_to_vmem [thread:$0]  (!%p2911_p6), %s353_s29, 2048, %s355_s3, [#allocation10], %s2798_s22, %s2798_s22, %s2799_s26  }
  0x29   : > { %s407_s5 = sshll.u32 %s3153_s8, 4  ;;  %s2804_s30 = smov [#allocation14]   ;;  %s408_s5 = int_to_ptr.vmem [resolvable:$true] %s407_s5 }
  0x2a   : > { %s380_s13 = sshll.u32 %s3170_s6, 4  ;;  %s382_s21 = sshll.u32 %s2804_s30, 4  ;;  %s381_s13 = int_to_ptr.hbm [resolvable:$true] %s380_s13  ;;  %s383_s21 = int_to_ptr.vmem [resolvable:$true] %s382_s21 }
  0x2b   : > { %2329 = dma.hbm_to_vmem [thread:$0]  (!%p2911_p6), %s381_s13, 1024, %s383_s21, [#allocation13], %s2798_s22, %s2798_s22, %s2799_s26  }
  0x2c   : > { %2335 = dma.vmem_to_smem (!%p2911_p6), %s408_s5, 32, %s2805_s28, [#allocation5]  }
  0x2d   : > { %s2806_s3 = smov [#allocation18]   ;;  %s2977_s13 = sadd.s32 1, %s2794_s20  }
  0x2e   : > { %s421_s15 = sshll.u32 %s2806_s3, 4  ;;  %s39_s23 = sadd.s32 1, %s2790_s19  ;;  %s422_s15 = int_to_ptr.vmem [resolvable:$true] %s421_s15 }
  0x2f   : > { %2338 = dma.hbm_to_vmem [thread:$0]  (!%p2911_p6), %s420_s1, 1024, %s422_s15, [#allocation16], %s2798_s22, %s2798_s22, %s2799_s26  }
  0x30   : > { %s36_s27 = ssub.s32 %s2794_s20, %s2977_s13  ;;  %p46_p7 = scmp.ne.s32.totalorder %s2790_s19, %s2786_s18 }
  0x31   : > { %p37_p8 = scmp.eq.s32.totalorder %s36_s27, 0  ;;  %p47_p9 = scmp.eq.s32.totalorder %s2794_s20, 0 }
  0x32   : > { %p52_p10 = scmp.ne.s32.totalorder %s2786_s18, %s2782_s17  ;;  %p286_p11 = scmp.eq.s32.totalorder %s2894_s24, 1 }
  0x33   : > { %s2989_s5 = scalar_select %p37_p8, %s2790_s19, %s39_s23  }
  0x34   : > { %p2991_p12 = por %p47_p9, %p46_p7  ;;  %p2997_p13 = por %p53_p1, %p52_p10 }
  0x35   : > { %p3001_p0 = por %p286_p11, %p46_p7  ;;  %p292_p2 = scmp.eq.s32.totalorder %s1794_s16, 1 }
  0x36   : > { %p2356_p4 = scmp.lt.s32.totalorder %s2794_s20, 2  ;;  %s435_s30 = sand.u32 1, %s2790_s19  }
  0x37   : > { %p3007_p6 = por %p292_p2, %p52_p10  ;;  %s1806_s28 = sshll.u32 %s435_s30, 4 }
  0x38   : > { %s2182_s29 = sshll.u32 %s2794_s20, 4  ;;  %s439_s23 = scalar_lea.vmem [#allocation2], %s1806_s28 }
  0x39   : > { %s444_s3 = scalar_lea.hbm %s3145_s0, %s2182_s29  ;;  %s447_s27 = sshll.u32 %s439_s23, 4  ;;  %s448_s27 = int_to_ptr.vmem [resolvable:$true] %s447_s27 }
  0x3a   : > { %s445_s15 = sshll.u32 %s444_s3, 4  ;;  %p3017_p7 = pnand %p2356_p4, %p2991_p12  ;;  %s446_s15 = int_to_ptr.hbm [resolvable:$true] %s445_s15 }
  0x3b   : > { %s436_s2 = scalar_lea.sflag [#allocation3], %s435_s30  ;;  %s2674_s4 = sshra.s32 %s446_s15, 4  ;;  %s2675_s4 = int_to_ptr.hbm [resolvable:$true] %s2674_s4 }
  0x3c   : > { %s2676_s6 = scalar_lea.hbm %s2675_s4, 16  ;;  %p2678_p9 = pneg %p3017_p7 }
  0x3d   : > { %p2677_p8 = scmp.ne.s32.totalorder %s2675_s4, %s2676_s6  ;;  %s2681_s14 = scalar_lea.hbm %s3145_s0, 32 }
  0x3e   : > { %p2682_p12 = scmp.lt.s32.totalorder %s2675_s4, %s3145_s0  ;;  %p2683_p2 = scmp.lt.s32.totalorder %s2681_s14, %s2676_s6 }
  0x3f   : > { %p2679_p10 = pnand %p2678_p9, %p2677_p8 }
  0x40   : > { %p2684_p4 = por %p2683_p2, %p2682_p12 }
  0x41   : > { %p2680_p11 = pneg %p2679_p10 }
  0x43   : > { %p2685_p5 = pnand %p2684_p4, %p2680_p11 }
  0x45   : > { %2688 = shalt.err (!%p2685_p5)
}
  0x46   : > { %s2807_s30 = smov 128   ;;  %s2808_s3 = smov 8  }
  0x47   : > { %2342 = dma.hbm_to_vmem [thread:$0]  (!%p3017_p7), %s446_s15, 256, %s448_s27, %s436_s2, %s2807_s30, %s2807_s30, %s2808_s3  }
  0x48   : > { %459 = sbr.rel (%p2899_p3) target bundleno = 1024 (0x400), region = 64  ;;  %s3034_s23 = sand.u32 (!%p2899_p3), 1, %s2786_s18  }
  0x49   : > { %s1810_s29 = sshll.u32 (!%p2899_p3), %s3034_s23, 4  ;;  %s462_s4 = scalar_lea.sflag (!%p2899_p3), [#allocation3], %s3034_s23 }
  0x4a   : > { %s3038_s6 = scalar_lea.vmem (!%p2899_p3), [#allocation2], %s1810_s29 }
  0x4d   : > { %2749 = dma.done.wait (%p2997_p13), %s462_s4, 256  }
  0x4e   : > { %2751 = vsyncadd (%p2997_p13), %s462_s4, 4294967040 }
  0x4f   : > { %2753 = dma.done.wait (%p53_p1), [#allocation7], 4096  }
  0x50   : > { %2755 = vsyncadd (%p53_p1), [#allocation7], 4294963200 }
  0x51   : > { %2757 = dma.done.wait (%p53_p1), [#allocation10], 3072  }
  0x52   : > { %2759 = vsyncadd (%p53_p1), [#allocation10], 4294964224 }
  0x53   : > { %2761 = dma.done.wait (%p53_p1), [#allocation13], 3072  }
  0x54   : > { %2763 = vsyncadd (%p53_p1), [#allocation13], 4294964224 }
  0x55   : > { %2765 = dma.done.wait (%p53_p1), [#allocation16], 128  }
  0x56   : > { %2767 = vsyncadd (%p53_p1), [#allocation16], 4294967168 }
  0x57   : > { %2769 = dma.done.wait (%p53_p1), [#allocation5], 32  }
  0x58   : > { %2771 = vsyncadd (%p53_p1), [#allocation5], 4294967264 }
  0x59   : > { %2773 = dma.done.wait (%p53_p1), [#allocation16], 1024  }
  0x5a   : > { %2775 = vsyncadd (%p53_p1), [#allocation16], 4294966272 }
  0x5b   : > { %516 = sfence }
  0x5c   : > { %v2190_v0 = vld [vmem:[#allocation6 + $0x38] sm:$0xff]  ;;  %v552_v2 = vlaneseq  ;;  %v2189_v3 = vld [vmem:[#allocation6 + $0x30] sm:$0xff]  ;;  %v2188_v7 = vld [vmem:[#allocation6 + $0x28] sm:$0xff]  ;;  %v2809_v12 = vmov 0.0   ;;  %s583_s2 = sld [smem:[#allocation17]]  ;;  %s1636_s30 = scalar_lea.hbm %s3156_s11, %s2894_s24 }
  0x5d   : > { %v2198_v1 = vld [vmem:[#allocation6 + $0x78] sm:$0xff]  ;;  %743 = vmatpush.bf16.msra.mxu0 %v2190_v0  ;;  %v2197_v4 = vld [vmem:[#allocation6 + $0x70] sm:$0xff]  ;;  %v2196_v8 = vld [vmem:[#allocation6 + $0x68] sm:$0xff]  ;;  %s3088_s25 = sld [smem:[#allocation17 + $0x1]]  ;;  %s549_s3 = scalar_lea.vmem [#allocation19], %s3034_s23 }
  0x5e   : > { %757 = vmatpush.bf16.msra.mxu1 %v2198_v1  ;;  %v3068_v5 = vshrl.u32 %v552_v2, 7  ;;  %v2214_v9 = vld [vmem:[#allocation8 + $0x78] sm:$0xff]  ;;  %v579_v10 = vld [vmem:[%s3038_s6] sm:$0xff]  ;;  %v2212_v20 = vld [vmem:[#allocation8 + $0x68] sm:$0xff]  ;;  %s3090_s22 = sld [smem:[#allocation17 + $0x2]]  ;;  %s1638_s29 = sshll.u32 %s549_s3, 4  ;;  %s1639_s29 = int_to_ptr.vmem [resolvable:$true] %s1638_s29 }
  0x5f   : > { %v580_v11 = vld [vmem:[%s3038_s6 + $0x8] sm:$0xff]  ;;  %944 = vmatpush.bf16.msra.mxu3 %v2214_v9  ;;  %v2213_v15 = vld [vmem:[#allocation8 + $0x70] sm:$0xff]  ;;  %v2187_v16 = vld [vmem:[#allocation6 + $0x20] sm:$0xff]  ;;  %v592_v18 = vrot.slane %v579_v10, 7  ;;  %v581_v31 = vpack.c.bf16 %v579_v10, %v579_v10  ;;  %s1983_s15 = sld [smem:[#allocation17 + $0x80]]  ;;  %s1640_s4 = sshll.u32 %s1636_s30, 4  ;;  %s1641_s4 = int_to_ptr.hbm [resolvable:$true] %s1640_s4 }
  0x60   : > { %v559_v6 = vand.u32 15, %v3068_v5  ;;  %v2206_v14 = vld [vmem:[#allocation8 + $0x38] sm:$0xff]  ;;  %v2195_v17 = vld [vmem:[#allocation6 + $0x60] sm:$0xff]  ;;  %v593_v19 = vrot.slane %v580_v11, 7  ;;  %vm594_vm2 = vcmp.lt.s32.totalorder %v3068_v5, 1  ;;  %v2185_v26 = vld [vmem:[#allocation6 + $0x10] sm:$0xff]  ;;  %v582_v32 = vpack.c.bf16 %v580_v11, %v580_v11 }
  0x61   : > { %744 = vmatpush.bf16.msra.mxu0 %v2189_v3  ;;  %930 = vmatpush.bf16.msra.mxu2 %v2206_v14  ;;  %v2186_v21 = vld [vmem:[#allocation6 + $0x18] sm:$0xff]  ;;  %v2193_v27 = vld [vmem:[#allocation6 + $0x50] sm:$0xff]  ;;  %v2184_v33 = vld [vmem:[#allocation6 + $0x8] sm:$0xff]  ;;  %v609_v37 = vunpack.c.l.b16 %v581_v31  ;;  %vm1067_vm9 = vcmp.lt.s32.totalorder %v3068_v5, 2  ;;  %s3105_s27 = sld [smem:[#allocation17 + $0x81]]  ;;  %s1628_s6 = scalar_lea.sflag [#allocation4], %s3034_s23 }
  0x62   : > { %758 = vmatpush.bf16.msra.mxu1 %v2197_v4  ;;  %vm1059_vm0 = vcmp.ge.s32.totalorder %v559_v6, 2  ;;  %vm586_vm1 = vcmp.ge.s32.totalorder %v559_v6, 1  ;;  %v2194_v22 = vld [vmem:[#allocation6 + $0x58] sm:$0xff]  ;;  %v596_v24 = vsel %vm594_vm2, %v593_v19, %v592_v18  ;;  %v595_v28 = vsel %vm594_vm2, %v592_v18, %v593_v19  ;;  %v2192_v34 = vld [vmem:[#allocation6 + $0x48] sm:$0xff]  ;;  %v2183_v39 = vld [vmem:[#allocation6] sm:$0xff]  ;;  %s1985_s16 = sld [smem:[#allocation17 + $0x82]] }
  0x63   : > { %v3073_v13 = vsel %vm1059_vm0, 1.0, %v2809_v12  ;;  %945 = vmatpush.bf16.msra.mxu3 %v2213_v15  ;;  %v3076_v23 = vsel %vm586_vm1, 1.0, %v2809_v12  ;;  %v600_v30 = vpack.c.bf16 %v595_v28, %v595_v28  ;;  %v610_v38 = vunpack.c.l.b16 %v582_v32  ;;  %v2191_v40 = vld [vmem:[#allocation6 + $0x40] sm:$0xff]  ;;  %v2222_v41 = vld [vmem:[#allocation9 + $0x38] sm:$0xff]  ;;  %v2205_v44 = vld [vmem:[#allocation8 + $0x30] sm:$0xff]  ;;  %s2724_s24 = scalar_lea.hbm %s3156_s11, 2 }
  0x64   : > { %v597_v25 = vmul.f32 %v3076_v23, %v596_v24  ;;  %v2211_v45 = vld [vmem:[#allocation8 + $0x60] sm:$0xff]  ;;  %v2221_v46 = vld [vmem:[#allocation9 + $0x30] sm:$0xff]  ;;  %v2204_v47 = vld [vmem:[#allocation8 + $0x28] sm:$0xff]  ;;  %vm1529_vm0 = vcmask 130048  }
  0x65   : > { %745 = vmatpush.bf16.msra.mxu0 %v2188_v7  ;;  %v604_v36 = vunpack.c.l.b16 %v600_v30  ;;  %v611_v43 = vpack.c.b16 %v610_v38, %v609_v37  ;;  %931 = vmatpush.bf16.msra.mxu2 %v2205_v44  ;;  %v2210_v48 = vld [vmem:[#allocation8 + $0x58] sm:$0xff]  ;;  %v2220_v49 = vld [vmem:[#allocation9 + $0x28] sm:$0xff]  ;;  %v2203_v50 = vld [vmem:[#allocation8 + $0x20] sm:$0xff]  ;;  %v773_v7 = vstv %s583_s2  ;;  %s2718_s2 = sshra.s32 %s1641_s4, 4  ;;  %s2719_s2 = int_to_ptr.hbm [resolvable:$true] %s2718_s2 }
  0x66   : > { %759 = vmatpush.bf16.msra.mxu1 %v2196_v8  ;;  %v599_v29 = vpack.c.bf16 %v597_v25, %v597_v25  ;;  %v2209_v51 = vld [vmem:[#allocation8 + $0x50] sm:$0xff]  ;;  %v2219_v52 = vld [vmem:[#allocation9 + $0x20] sm:$0xff]  ;;  %v2202_v53 = vld [vmem:[#allocation8 + $0x18] sm:$0xff]  ;;  %p2725_p13 = scmp.lt.s32.totalorder %s2719_s2, %s3156_s11 }
  0x67   : > { %946 = vmatpush.bf16.msra.mxu3 %v2212_v20  ;;  %v2208_v54 = vld [vmem:[#allocation8 + $0x48] sm:$0xff]  ;;  %v2218_v55 = vld [vmem:[#allocation9 + $0x18] sm:$0xff]  ;;  %v2201_v56 = vld [vmem:[#allocation8 + $0x10] sm:$0xff] }
  0x68   : > { %v603_v35 = vunpack.c.l.b16 %v599_v29  ;;  %v2207_v57 = vld [vmem:[#allocation8 + $0x40] sm:$0xff]  ;;  %v2217_v58 = vld [vmem:[#allocation9 + $0x10] sm:$0xff]  ;;  %v2200_v59 = vld [vmem:[#allocation8 + $0x8] sm:$0xff] }
  0x69   : > { %746 = vmatpush.bf16.msra.mxu0 %v2187_v16  ;;  %932 = vmatpush.bf16.msra.mxu2 %v2204_v47  ;;  %v2216_v60 = vld [vmem:[#allocation9 + $0x8] sm:$0xff]  ;;  %v2199_v61 = vld [vmem:[#allocation8] sm:$0xff]  ;;  %v2230_v63 = vld [vmem:[#allocation11 + $0x38] sm:$0xff] }
  0x6a   : > { %760 = vmatpush.bf16.msra.mxu1 %v2195_v17  ;;  %v605_v42 = vpack.c.b16 %v604_v36, %v603_v35  ;;  %v2215_v62 = vld [vmem:[#allocation9] sm:$0xff]  ;;  %v2229_v1 = vld [vmem:[#allocation11 + $0x30] sm:$0xff]  ;;  %v2226_v37 = vld [vmem:[#allocation11 + $0x18] sm:$0xff] }
  0x6b   : > { %947 = vmatpush.bf16.msra.mxu3 %v2211_v45  ;;  %v2413_v0 = vld [vmem:[#allocation15] ss:$0 sm:$0xff]  ;;  %v2237_v36 = vld [vmem:[#allocation11 + $0x70] sm:$0xff]  ;;  %v2236_v38 = vld [vmem:[#allocation11 + $0x68] sm:$0xff] }
  0x6c   : > { %v2227_v35 = vld [vmem:[#allocation11 + $0x20] sm:$0xff]  ;;  %v2262_v44 = vld [vmem:[#allocation14 + $0x38] sm:$0xff]  ;;  %v2232_v45 = vld [vmem:[#allocation11 + $0x48] sm:$0xff] }
  0x6d   : > { %747 = vmatpush.bf16.msra.mxu0 %v2186_v21  ;;  %933 = vmatpush.bf16.msra.mxu2 %v2203_v50  ;;  %v2231_v47 = vld [vmem:[#allocation11 + $0x40] sm:$0xff] }
  0x6e   : > { %761 = vmatpush.bf16.msra.mxu1 %v2194_v22  ;;  %v2415_v50 = vld [vmem:[#allocation15 + $0x1] ss:$0 sm:$0xff] }
  0x6f   : > { %948 = vmatpush.bf16.msra.mxu3 %v2210_v48  ;;  %v2260_v48 = vld [vmem:[#allocation14 + $0x28] sm:$0xff] }
  0x71   : > { %748 = vmatpush.bf16.msra.mxu0 %v2185_v26  ;;  %934 = vmatpush.bf16.msra.mxu2 %v2202_v53  ;;  %v2414_v53 = vld [vmem:[#allocation15 + $0x2] ss:$0 sm:$0xff] }
  0x72   : > { %762 = vmatpush.bf16.msra.mxu1 %v2193_v27 }
  0x73   : > { %949 = vmatpush.bf16.msra.mxu3 %v2209_v51  ;;  %v2258_v51 = vld [vmem:[#allocation14 + $0x18] sm:$0xff] }
  0x75   : > { %749 = vmatpush.bf16.msra.mxu0 %v2184_v33  ;;  %935 = vmatpush.bf16.msra.mxu2 %v2201_v56  ;;  %v2228_v33 = vld [vmem:[#allocation11 + $0x28] sm:$0xff] }
  0x76   : > { %763 = vmatpush.bf16.msra.mxu1 %v2192_v34  ;;  %v2238_v34 = vld [vmem:[#allocation11 + $0x78] sm:$0xff] }
  0x77   : > { %950 = vmatpush.bf16.msra.mxu3 %v2208_v54 }
  0x79   : > { %750 = vmatpush.bf16.msra.mxu0 %v2183_v39  ;;  %936 = vmatpush.bf16.msra.mxu2 %v2200_v59  ;;  %v2235_v39 = vld [vmem:[#allocation11 + $0x60] sm:$0xff] }
  0x7a   : > { %764 = vmatpush.bf16.msra.mxu1 %v2191_v40  ;;  %v2224_v40 = vld [vmem:[#allocation11 + $0x8] sm:$0xff] }
  0x7b   : > { %951 = vmatpush.bf16.msra.mxu3 %v2207_v57  ;;  %v2257_v57 = vld [vmem:[#allocation14 + $0x10] sm:$0xff] }
  0x7c   : > { %751 = vmatmul.bf16.vlgmr.msra.gmra.mxu0 %v605_v42  ;;  %v2223_v42 = vld [vmem:[#allocation11] sm:$0xff] }
  0x7d   : > { %1031 = vmatpush.bf16.msrb.mxu0 %v2222_v41  ;;  %765 = vmatmul.bf16.vlgmr.msra.gmra.mxu1 %v611_v43  ;;  %v2234_v41 = vld [vmem:[#allocation11 + $0x58] sm:$0xff] }
  0x7e   : > { %937 = vmatpush.bf16.msra.mxu2 %v2199_v61  ;;  %1216 = vmatpush.bf16.msrb.mxu1 %v2230_v63 }
  0x81   : > { %1032 = vmatpush.bf16.msrb.mxu0 %v2221_v46  ;;  %v2261_v46 = vld [vmem:[#allocation14 + $0x30] sm:$0xff] }
  0x82   : > { %1217 = vmatpush.bf16.msrb.mxu1 %v2229_v1  ;;  %1230 = vmatpush.bf16.msrb.mxu2 %v2238_v34 }
  0x85   : > { %1033 = vmatpush.bf16.msrb.mxu0 %v2220_v49  ;;  %v2259_v49 = vld [vmem:[#allocation14 + $0x20] sm:$0xff] }
  0x86   : > { %1218 = vmatpush.bf16.msrb.mxu1 %v2228_v33  ;;  %1231 = vmatpush.bf16.msrb.mxu2 %v2237_v36 }
  0x89   : > { %1034 = vmatpush.bf16.msrb.mxu0 %v2219_v52 }
  0x8a   : > { %1219 = vmatpush.bf16.msrb.mxu1 %v2227_v35  ;;  %1232 = vmatpush.bf16.msrb.mxu2 %v2236_v38  ;;  %v2245_v38 = vld [vmem:[#allocation12 + $0x30] sm:$0xff] }
  0x8d   : > { %1035 = vmatpush.bf16.msrb.mxu0 %v2218_v55 }
  0x8e   : > { %1220 = vmatpush.bf16.msrb.mxu1 %v2226_v37  ;;  %1233 = vmatpush.bf16.msrb.mxu2 %v2235_v39  ;;  %v2244_v39 = vld [vmem:[#allocation12 + $0x28] sm:$0xff] }
  0x91   : > { %1036 = vmatpush.bf16.msrb.mxu0 %v2217_v58  ;;  %v960_v58 = vstv %s3088_s25  ;;  %s2720_s25 = scalar_lea.hbm %s2719_s2, 1 }
  0x92   : > { %1234 = vmatpush.bf16.msrb.mxu2 %v2234_v41  ;;  %v2243_v41 = vld [vmem:[#allocation12 + $0x20] sm:$0xff]  ;;  %p2721_p1 = scmp.ne.s32.totalorder %s2719_s2, %s2720_s25  ;;  %p2726_p7 = scmp.lt.s32.totalorder %s2724_s24, %s2720_s25 }
  0x94   : > { %p2722_p3 = pnand %p2721_p1, %p3001_p0  ;;  %p2727_p8 = por %p2726_p7, %p2725_p13 }
  0x95   : > { %1037 = vmatpush.bf16.msrb.mxu0 %v2216_v60 }
  0x96   : > { %p2723_p5 = pneg %p2722_p3 }
  0x98   : > { %p2728_p9 = pnand %p2727_p8, %p2723_p5 }
  0x99   : > { %1038 = vmatpush.bf16.msrb.mxu0 %v2215_v62  ;;  %v2256_v62 = vld [vmem:[#allocation14 + $0x8] sm:$0xff] }
  0x9c   : > { %1039 = vmatmul.bf16.vlgmr.msrb.gmra.mxu0 %v611_v43  ;;  %v2233_v43 = vld [vmem:[#allocation11 + $0x50] sm:$0xff] }
  0x9d   : > { %1235 = vmatpush.bf16.msrb.mxu2 %v2233_v43  ;;  %v2242_v43 = vld [vmem:[#allocation12 + $0x18] sm:$0xff] }
  0xa1   : > { %1236 = vmatpush.bf16.msrb.mxu2 %v2232_v45  ;;  %v2241_v45 = vld [vmem:[#allocation12 + $0x10] sm:$0xff] }
  0xa5   : > { %1237 = vmatpush.bf16.msrb.mxu2 %v2231_v47  ;;  %v2240_v47 = vld [vmem:[#allocation12 + $0x8] sm:$0xff] }
  0xf9   : > { %v752_v2 = vpop.f32.mrf.mxu0 }
  0xfa   : > { %v766_v3 = vpop.f32.mrf.mxu1  ;;  %v753_v4 = vadd.f32 %v2413_v0, %v752_v2 }
  0xfc   : > { %v767_v6 = vadd.f32 %v766_v3, %v753_v4  ;;  %v1049_v3 = vstv %s3090_s22  ;;  %v2255_v4 = vld [vmem:[#allocation14] sm:$0xff] }
  0xfe   : > { %v774_v8 = vmul.f32 %v773_v7, %v767_v6  ;;  %vm771_vm3 = vcmp.ge.f32.partialorder %v767_v6, 0.0 }
 0x100   : > { %v776_v14 = vsel %vm771_vm3, %v767_v6, %v774_v8 }
 0x101   : > { %v754_v9 = vpop.f32.mrf.mxu0  ;;  %v778_v16 = vpack.c.bf16 %v776_v14, %v776_v14  ;;  %v780_v19 = vrot.slane %v776_v14, 7 }
 0x102   : > { %v755_v10 = vadd.f32 %v2413_v0, %v754_v9  ;;  %v768_v11 = vpop.f32.mrf.mxu1 }
 0x103   : > { %v796_v21 = vunpack.c.l.b16 %v778_v16  ;;  %v2254_v16 = vld [vmem:[#allocation12 + $0x78] sm:$0xff] }
 0x104   : > { %v769_v12 = vadd.f32 %v768_v11, %v755_v10  ;;  %1417 = vmatpush.bf16.msra.mxu0 %v2254_v16  ;;  %v2270_v16 = vld [vmem:[#allocation18 + $0x38] sm:$0xff] }
 0x106   : > { %vm772_vm4 = vcmp.ge.f32.partialorder %v769_v12, 0.0  ;;  %v775_v15 = vmul.f32 %v773_v7, %v769_v12 }
 0x108   : > { %v777_v17 = vsel %vm772_vm4, %v769_v12, %v775_v15 }
 0x109   : > { %v779_v18 = vpack.c.bf16 %v777_v17, %v777_v17  ;;  %v781_v20 = vrot.slane %v777_v17, 7  ;;  %v2246_v17 = vld [vmem:[#allocation12 + $0x38] sm:$0xff] }
 0x10a   : > { %1403 = vmatpush.bf16.msrb.mxu3 %v2246_v17  ;;  %v2269_v17 = vld [vmem:[#allocation18 + $0x30] sm:$0xff] }
 0x10b   : > { %v797_v22 = vunpack.c.l.b16 %v779_v18  ;;  %v782_v24 = vsel %vm594_vm2, %v780_v19, %v781_v20  ;;  %v783_v25 = vsel %vm594_vm2, %v781_v20, %v780_v19  ;;  %v2253_v19 = vld [vmem:[#allocation12 + $0x70] sm:$0xff] }
 0x10c   : > { %v784_v26 = vmul.f32 %v3076_v23, %v783_v25  ;;  %v787_v27 = vpack.c.bf16 %v782_v24, %v782_v24  ;;  %v2225_v23 = vld [vmem:[#allocation11 + $0x10] sm:$0xff]  ;;  %1418 = vmatpush.bf16.msra.mxu0 %v2253_v19 }
 0x10d   : > { %v798_v28 = vpack.c.b16 %v797_v22, %v796_v21  ;;  %1221 = vmatpush.bf16.msrb.mxu1 %v2225_v23  ;;  %v2251_v23 = vld [vmem:[#allocation12 + $0x60] sm:$0xff] }
 0x10e   : > { %v786_v29 = vpack.c.bf16 %v784_v26, %v784_v26  ;;  %v791_v31 = vunpack.c.l.b16 %v787_v27  ;;  %v2252_v26 = vld [vmem:[#allocation12 + $0x68] sm:$0xff]  ;;  %1404 = vmatpush.bf16.msrb.mxu3 %v2245_v38  ;;  %v1522_v38 = vstv %s1985_s16 }
 0x10f   : > { %952 = vmatmul.bf16.vlgmr.msra.gmra.mxu3 %v798_v28 }
 0x110   : > { %v790_v30 = vunpack.c.l.b16 %v786_v29  ;;  %1419 = vmatpush.bf16.msra.mxu0 %v2252_v26 }
 0x111   : > { %1222 = vmatpush.bf16.msrb.mxu1 %v2224_v40  ;;  %v2250_v40 = vld [vmem:[#allocation12 + $0x58] sm:$0xff] }
 0x112   : > { %v792_v32 = vpack.c.b16 %v791_v31, %v790_v30  ;;  %1405 = vmatpush.bf16.msrb.mxu3 %v2244_v39 }
 0x114   : > { %938 = vmatmul.bf16.vlgmr.msra.gmra.mxu2 %v792_v32  ;;  %1420 = vmatpush.bf16.msra.mxu0 %v2251_v23 }
 0x115   : > { %1223 = vmatpush.bf16.msrb.mxu1 %v2223_v42  ;;  %v2249_v42 = vld [vmem:[#allocation12 + $0x50] sm:$0xff] }
 0x116   : > { %1406 = vmatpush.bf16.msrb.mxu3 %v2243_v41 }
 0x118   : > { %1421 = vmatpush.bf16.msra.mxu0 %v2250_v40 }
 0x119   : > { %1504 = vmatpush.bf16.msra.mxu1 %v2262_v44  ;;  %v1040_v55 = vpop.f32.mrf.mxu0  ;;  %v2248_v44 = vld [vmem:[#allocation12 + $0x48] sm:$0xff] }
 0x11a   : > { %v1041_v60 = vadd.f32 %v2414_v53, %v1040_v55  ;;  %1407 = vmatpush.bf16.msrb.mxu3 %v2242_v43  ;;  %v2264_v43 = vld [vmem:[#allocation18 + $0x8] sm:$0xff] }
 0x11c   : > { %1422 = vmatpush.bf16.msra.mxu0 %v2249_v42 }
 0x11d   : > { %1505 = vmatpush.bf16.msra.mxu1 %v2261_v46  ;;  %v2247_v46 = vld [vmem:[#allocation12 + $0x40] sm:$0xff] }
 0x11e   : > { %1408 = vmatpush.bf16.msrb.mxu3 %v2241_v45 }
 0x120   : > { %1423 = vmatpush.bf16.msra.mxu0 %v2248_v44 }
 0x121   : > { %1506 = vmatpush.bf16.msra.mxu1 %v2260_v48  ;;  %v1042_v7 = vpop.f32.mrf.mxu0  ;;  %v2239_v48 = vld [vmem:[#allocation12] sm:$0xff] }
 0x122   : > { %v1043_v11 = vadd.f32 %v2414_v53, %v1042_v7  ;;  %1409 = vmatpush.bf16.msrb.mxu3 %v2240_v47 }
 0x124   : > { %1424 = vmatpush.bf16.msra.mxu0 %v2247_v46 }
 0x125   : > { %1507 = vmatpush.bf16.msra.mxu1 %v2259_v49  ;;  %v2416_v49 = vld [vmem:[#allocation15 + $0x3] ss:$0 sm:$0xff] }
 0x126   : > { %1410 = vmatpush.bf16.msrb.mxu3 %v2239_v48  ;;  %v1528_v48 = vld [vmem:[%s3154_s9] sm:$0x1] }
 0x129   : > { %1508 = vmatpush.bf16.msra.mxu1 %v2258_v51 }
 0x12a   : > { %1613 = vmatpush.bf16.msra.mxu3 %v2270_v16 }
 0x12d   : > { %1509 = vmatpush.bf16.msra.mxu1 %v2257_v57 }
 0x12e   : > { %1614 = vmatpush.bf16.msra.mxu3 %v2269_v17 }
 0x131   : > { %1510 = vmatpush.bf16.msra.mxu1 %v2256_v62 }
 0x135   : > { %1511 = vmatpush.bf16.msra.mxu1 %v2255_v4 }
 0x192   : > { %v953_v52 = vpop.f32.mrf.mxu3 }
 0x197   : > { %v939_v54 = vpop.f32.mrf.mxu2 }
 0x198   : > { %v940_v56 = vadd.f32 %v2415_v50, %v939_v54  ;;  %v1246_v54 = vstv %s1983_s15 }
 0x19a   : > { %v954_v59 = vadd.f32 %v953_v52, %v940_v56  ;;  %v955_v6 = vpop.f32.mrf.mxu3 }
 0x19c   : > { %vm958_vm5 = vcmp.ge.f32.partialorder %v954_v59, 0.0  ;;  %v961_v61 = vmul.f32 %v960_v58, %v954_v59 }
 0x19e   : > { %v963_v63 = vsel %vm958_vm5, %v954_v59, %v961_v61 }
 0x19f   : > { %v1045_v0 = vadd.f32 %v1041_v60, %v963_v63  ;;  %v941_v1 = vpop.f32.mrf.mxu2 }
 0x1a0   : > { %v942_v2 = vadd.f32 %v2415_v50, %v941_v1 }
 0x1a1   : > { %v1050_v9 = vmul.f32 %v1049_v3, %v1045_v0  ;;  %vm1047_vm7 = vcmp.ge.f32.partialorder %v1045_v0, 0.0 }
 0x1a2   : > { %v956_v8 = vadd.f32 %v955_v6, %v942_v2 }
 0x1a3   : > { %v1052_v15 = vsel %vm1047_vm7, %v1045_v0, %v1050_v9 }
 0x1a4   : > { %vm959_vm6 = vcmp.ge.f32.partialorder %v956_v8, 0.0  ;;  %v962_v10 = vmul.f32 %v960_v58, %v956_v8  ;;  %v1054_v20 = vpack.c.bf16 %v1052_v15, %v1052_v15  ;;  %v1065_v24 = vrot.slane %v1052_v15, 6 }
 0x1a6   : > { %v964_v12 = vsel %vm959_vm6, %v956_v8, %v962_v10  ;;  %v1082_v27 = vunpack.c.l.b16 %v1054_v20  ;;  %v2268_v20 = vld [vmem:[#allocation18 + $0x28] sm:$0xff] }
 0x1a7   : > { %v1046_v14 = vadd.f32 %v1043_v11, %v964_v12  ;;  %1615 = vmatpush.bf16.msra.mxu3 %v2268_v20 }
 0x1a9   : > { %vm1048_vm8 = vcmp.ge.f32.partialorder %v1046_v14, 0.0  ;;  %v1051_v18 = vmul.f32 %v1049_v3, %v1046_v14 }
 0x1ab   : > { %v1053_v21 = vsel %vm1048_vm8, %v1046_v14, %v1051_v18  ;;  %v2418_v18 = vld [vmem:[#allocation15 + $0x4] ss:$0 sm:$0xff] }
 0x1ac   : > { %v1055_v22 = vpack.c.bf16 %v1053_v21, %v1053_v21  ;;  %v1066_v25 = vrot.slane %v1053_v21, 6 }
 0x1ae   : > { %v1083_v28 = vunpack.c.l.b16 %v1055_v22  ;;  %v1068_v29 = vsel %vm1067_vm9, %v1065_v24, %v1066_v25  ;;  %v1069_v30 = vsel %vm1067_vm9, %v1066_v25, %v1065_v24  ;;  %v1433_v22 = vstv %s3105_s27  ;;  %v2267_v25 = vld [vmem:[#allocation18 + $0x20] sm:$0xff] }
 0x1af   : > { %v1070_v31 = vmul.f32 %v3073_v13, %v1069_v30  ;;  %v1073_v32 = vpack.c.bf16 %v1068_v29, %v1068_v29  ;;  %1616 = vmatpush.bf16.msra.mxu3 %v2267_v25  ;;  %v2266_v29 = vld [vmem:[#allocation18 + $0x18] sm:$0xff] }
 0x1b0   : > { %v1084_v33 = vpack.c.b16 %v1083_v28, %v1082_v27  ;;  %v2417_v27 = vld [vmem:[#allocation15 + $0x5] ss:$0 sm:$0xff] }
 0x1b1   : > { %v1072_v34 = vpack.c.bf16 %v1070_v31, %v1070_v31  ;;  %v1077_v36 = vunpack.c.l.b16 %v1073_v32 }
 0x1b2   : > { %1238 = vmatmul.bf16.vlgmr.msrb.gmra.mxu2 %v1084_v33 }
 0x1b3   : > { %v1076_v35 = vunpack.c.l.b16 %v1072_v34  ;;  %1617 = vmatpush.bf16.msra.mxu3 %v2266_v29 }
 0x1b5   : > { %v1078_v37 = vpack.c.b16 %v1077_v36, %v1076_v35 }
 0x1b7   : > { %1224 = vmatmul.bf16.vlgmr.msrb.gmra.mxu1 %v1078_v37  ;;  %v2265_v37 = vld [vmem:[#allocation18 + $0x10] sm:$0xff] }
 0x1b8   : > { %1618 = vmatpush.bf16.msra.mxu3 %v2265_v37 }
 0x1bc   : > { %1619 = vmatpush.bf16.msra.mxu3 %v2264_v43 }
 0x1c7   : > { %1512 = vmatmul.bf16.vlgmr.msra.gmra.mxu1 %v1084_v33 }
 0x234   : > { %v1225_v50 = vpop.f32.mrf.mxu1 }
 0x235   : > { %v1226_v51 = vadd.f32 %v2416_v49, %v1225_v50  ;;  %v1239_v52 = vpop.f32.mrf.mxu2 }
 0x237   : > { %v1240_v53 = vadd.f32 %v1239_v52, %v1226_v51 }
 0x239   : > { %v1247_v55 = vmul.f32 %v1246_v54, %v1240_v53  ;;  %vm1244_vm10 = vcmp.ge.f32.partialorder %v1240_v53, 0.0 }
 0x23b   : > { %v1249_v59 = vsel %vm1244_vm10, %v1240_v53, %v1247_v55 }
 0x23c   : > { %v1227_v56 = vpop.f32.mrf.mxu1  ;;  %v1251_v62 = vpack.c.bf16 %v1249_v59, %v1249_v59  ;;  %v1253_v0 = vrot.slane %v1249_v59, 6 }
 0x23d   : > { %v1228_v57 = vadd.f32 %v2416_v49, %v1227_v56  ;;  %v1241_v58 = vpop.f32.mrf.mxu2  ;;  %v2263_v49 = vld [vmem:[#allocation18] sm:$0xff] }
 0x23e   : > { %v1269_v3 = vunpack.c.l.b16 %v1251_v62  ;;  %1620 = vmatpush.bf16.msra.mxu3 %v2263_v49 }
 0x23f   : > { %v1242_v60 = vadd.f32 %v1241_v58, %v1228_v57 }
 0x241   : > { %vm1245_vm11 = vcmp.ge.f32.partialorder %v1242_v60, 0.0  ;;  %v1248_v61 = vmul.f32 %v1246_v54, %v1242_v60  ;;  %v1564_v54 = vld [vmem:[#allocation15 + $0x6] sm:$0x1] }
 0x243   : > { %v1250_v63 = vsel %vm1245_vm11, %v1242_v60, %v1248_v61 }
 0x244   : > { %v1252_v1 = vpack.c.bf16 %v1250_v63, %v1250_v63  ;;  %v1254_v2 = vrot.slane %v1250_v63, 6 }
 0x246   : > { %v1270_v4 = vunpack.c.l.b16 %v1252_v1  ;;  %v1255_v6 = vsel %vm1067_vm9, %v1253_v0, %v1254_v2  ;;  %v1256_v7 = vsel %vm1067_vm9, %v1254_v2, %v1253_v0 }
 0x247   : > { %v1257_v8 = vmul.f32 %v3073_v13, %v1256_v7  ;;  %v1260_v9 = vpack.c.bf16 %v1255_v6, %v1255_v6  ;;  %v1513_v13 = vpop.f32.mrf.mxu1 }
 0x248   : > { %v1271_v10 = vpack.c.b16 %v1270_v4, %v1269_v3  ;;  %v1514_v32 = vadd.f32 %v2417_v27, %v1513_v13 }
 0x249   : > { %v1259_v11 = vpack.c.bf16 %v1257_v8, %v1257_v8  ;;  %v1264_v14 = vunpack.c.l.b16 %v1260_v9 }
 0x24a   : > { %1425 = vmatmul.bf16.vlgmr.msra.gmra.mxu0 %v1271_v10 }
 0x24b   : > { %v1263_v12 = vunpack.c.l.b16 %v1259_v11 }
 0x24d   : > { %v1265_v15 = vpack.c.b16 %v1264_v14, %v1263_v12 }
 0x24f   : > { %1411 = vmatmul.bf16.vlgmr.msrb.gmra.mxu3 %v1265_v15  ;;  %v1515_v34 = vpop.f32.mrf.mxu1 }
 0x250   : > { %v1516_v39 = vadd.f32 %v2417_v27, %v1515_v34 }
 0x2c7   : > { %v1426_v19 = vpop.f32.mrf.mxu0 }
 0x2cf   : > { %v1428_v33 = vpop.f32.mrf.mxu0 }
 0x2d2   : > { %v1412_v5 = vpop.f32.mrf.mxu3 }
 0x2d3   : > { %v1413_v21 = vadd.f32 %v2418_v18, %v1412_v5 }
 0x2d5   : > { %v1427_v24 = vadd.f32 %v1426_v19, %v1413_v21 }
 0x2d7   : > { %v1434_v26 = vmul.f32 %v1433_v22, %v1427_v24  ;;  %vm1431_vm12 = vcmp.ge.f32.partialorder %v1427_v24, 0.0 }
 0x2d9   : > { %v1436_v30 = vsel %vm1431_vm12, %v1427_v24, %v1434_v26 }
 0x2da   : > { %v1414_v28 = vpop.f32.mrf.mxu3  ;;  %v1518_v36 = vadd.f32 %v1514_v32, %v1436_v30 }
 0x2db   : > { %v1415_v31 = vadd.f32 %v2418_v18, %v1414_v28 }
 0x2dc   : > { %v1523_v41 = vmul.f32 %v1522_v38, %v1518_v36  ;;  %vm1520_vm14 = vcmp.ge.f32.partialorder %v1518_v36, 0.0 }
 0x2dd   : > { %v1429_v35 = vadd.f32 %v1428_v33, %v1415_v31 }
 0x2de   : > { %v1525_v45 = vsel %vm1520_vm14, %v1518_v36, %v1523_v41 }
 0x2df   : > { %vm1432_vm13 = vcmp.ge.f32.partialorder %v1429_v35, 0.0  ;;  %v1435_v23 = vmul.f32 %v1433_v22, %v1429_v35 }
 0x2e1   : > { %v1437_v40 = vsel %vm1432_vm13, %v1429_v35, %v1435_v23 }
 0x2e2   : > { %v1519_v42 = vadd.f32 %v1516_v39, %v1437_v40 }
 0x2e4   : > { %v1524_v44 = vmul.f32 %v1522_v38, %v1519_v42  ;;  %vm1521_vm15 = vcmp.ge.f32.partialorder %v1519_v42, 0.0 }
 0x2e6   : > { %v1526_v46 = vsel %vm1521_vm15, %v1519_v42, %v1524_v44 }
 0x2e7   : > { %v1527_v47 = vpack.c.bf16 %v1526_v46, %v1525_v45 }
 0x2e9   : > { %1540 = vmatpush.bf16.msra.mxu2 %v1527_v47 }
 0x2ec   : > { %2147 = vmatmul.msk.bf16.vlgmr.msra.gmra.mxu2 %vm1529_vm0, %v1528_v48 }
 0x36f   : > { %v1542_v50 = vpop.f32.mrf.mxu2 }
 0x370   : > { %v1546_v51 = vmul.f32 0.0625, %v1542_v50 }
 0x372   : > { %v1547_v52 = vpack.c.bf16 %v1546_v51, %v1546_v51 }
 0x374   : > { %1621 = vmatmul.bf16.vlgmr.msra.gmra.mxu3 %v1547_v52 }
 0x377   : > { %v1544_v53 = vpop.f32.mrf.mxu2 }
 0x3f7   : > { %v1622_v55 = vpop.f32.mrf.mxu3 }
 0x3f8   : > { %v1623_v56 = vadd.f32 %v1622_v55, %v1564_v54 }
 0x3fa   : > { %1626 = vst [vmem:[%s549_s3] sm:$0x1] %v1623_v56 }
 0x3fb   : > { %2731 = shalt.err (!%p2728_p9)
}
 0x3fc   : > { %2309 = dma.vmem_to_hbm [thread:$0]  (%p3001_p0), %s1639_s29, 16, %s1641_s4, %s1628_s6  }
 0x3ff   : > { %v1624_v57 = vpop.f32.mrf.mxu3 }
 0x400 PF: > { %s1652_s23 = sand.u32 1, %s2782_s17   ;;  %p3176_p10 = scmp.ge.s32.totalorder %s2794_s20, 2 }
 0x401   : > { %s1653_s28 = scalar_lea.sflag [#allocation4], %s1652_s23 }
 0x402   : > { %p2344_p11 = pnand %p3176_p10, %p3007_p6 }
 0x404   : > { %p2345_p12 = pneg %p2344_p11 }
 0x406   : > { %2777 = dma.done.wait (%p2345_p12), %s1653_s28, 16  }
 0x407   : > { %2779 = vsyncadd (%p2345_p12), %s1653_s28, 4294967280  ;;  %p29_p2 = scmp.ge.s32.totalorder %s2977_s13, 4   ;;  %s3177_s17 = smov %s2786_s18 }
 0x408   : > { %s3178_s18 = smov %s2790_s19  ;;  %s3179_s19 = smov %s2989_s5 }
 0x409   : > { %s3180_s20 = smov %s2977_s13  ;;  %31 = sbr.rel (!%p29_p2) target bundleno = 17 (0x11), region = 146 }
 0x40e   :  { %1658 = vsyncpa [#allocation3], 1 }
 0x40f   :  { %1660 = vsyncpa [#allocation3 + $0x1], 1 }
 0x410   :  { %1661 = vsyncpa [#allocation7], 1 }
 0x411   :  { %1662 = vsyncpa [#allocation10], 1 }
 0x412   :  { %1663 = vsyncpa [#allocation13], 1 }
 0x413   :  { %1664 = vsyncpa [#allocation16], 1 }
 0x414   :  { %1665 = vsyncpa [#allocation4], 1 }
 0x415   :  { %1667 = vsyncpa [#allocation4 + $0x1], 1 }
 0x416   :  { %1668 = vsyncpa [#allocation5], 1 }
 0x417   :  { %1670 = vsyncpa [#allocation5 + $0x1], 1 }

// kernel: tpu_custom_call.1
= control target key start
LH: loop header
LB: loop body
LE: loop exit
PB: predicated region body
PF: predicated region fallthrough
CT: control target
= control target key end

     0   :  { %s3145_s0 = inlined_call_operand.hbm [shape: f32[32,128], index: 0, kind: input, shape index: {}]   ;;  %s3146_s1 = inlined_call_operand.hbm [shape: bf16[256,128], index: 1, kind: input, shape index: {}]   ;;  %s3147_s2 = inlined_call_operand.hbm [shape: bf16[256,128], index: 2, kind: input, shape index: {}]   ;;  %s3148_s3 = inlined_call_operand.hbm [shape: bf16[128,128], index: 3, kind: input, shape index: {}]   ;;  %s3149_s4 = inlined_call_operand.hbm [shape: bf16[256,128], index: 4, kind: input, shape index: {}]   ;;  %s3150_s5 = inlined_call_operand.hbm [shape: bf16[256,128], index: 5, kind: input, shape index: {}]   ;;  %s3151_s6 = inlined_call_operand.hbm [shape: bf16[128,128], index: 6, kind: input, shape index: {}]   ;;  %s3152_s7 = inlined_call_operand.hbm [shape: f32[7,128], index: 7, kind: input, shape index: {}]   ;;  %s3153_s8 = inlined_call_operand.vmem [shape: f32[2,3], index: 8, kind: input, shape index: {}]   ;;  %s3154_s9 = inlined_call_operand.vmem [shape: bf16[1,16], index: 9, kind: input, shape index: {}]   ;;  %s3155_s10 = inlined_call_operand.hbm [shape: bf16[128,128], index: 10, kind: input, shape index: {}]   ;;  %s3156_s11 = inlined_call_operand.hbm [shape: f32[2,1,128], index: 11, kind: output, shape index: {}]  }
   0x1   :  { %3157 = sst [smem:[#allocation28_spill]] %s3146_s1 }
   0x2   :  { %3158 = sst [smem:[#allocation29_spill]] %s3147_s2 }
   0x3   :  { %3159 = sst [smem:[#allocation30_spill]] %s3148_s3 }
   0x4   :  { %3160 = sst [smem:[#allocation31_spill]] %s3149_s4 }
   0x5   :  { %3161 = sst [smem:[#allocation32_spill]] %s3150_s5 }
   0x6   :  { %3162 = sst [smem:[#allocation33_spill]] %s3151_s6 }
   0x7   :  { %16 = vsyncpa [#allocation3], 0 }
   0x8   :  { %18 = vsyncpa [#allocation3 + $0x1], 0 }
   0x9   :  { %19 = vsyncpa [#allocation7], 0 }
   0xa   :  { %20 = vsyncpa [#allocation10], 0 }
   0xb   :  { %21 = vsyncpa [#allocation13], 0 }
   0xc   :  { %22 = vsyncpa [#allocation16], 0 }
   0xd   :  { %23 = vsyncpa [#allocation5], 0 }
   0xe   :  { %24 = vsyncpa [#allocation4], 0 }
   0xf   :  { %26 = vsyncpa [#allocation4 + $0x1], 0  ;;  %s2870_s17 = smov 0   ;;  %s2872_s18 = smov 0  }
  0x10   :  { %s2874_s19 = smov 0   ;;  %s2876_s20 = smov 0  }
  0x11 LB: > { %s3163_s1 = sld [smem:[#allocation28_spill]]  ;;  %s2894_s24 = sadd.s32 4294967295, %s2794_s20   ;;  %s2794_s20 = sphi %s2876_s20, %s3180_s20   ;;  %s2790_s19 = sphi %s2874_s19, %s3179_s19   ;;  %s2786_s18 = sphi %s2872_s18, %s3178_s18   ;;  %s2782_s17 = sphi %s2870_s17, %s3177_s17  }
  0x12   : > { %p1795_p0 = scmp.ge.s32.totalorder %s2794_s20, 1  ;;  %p53_p1 = scmp.eq.s32.totalorder %s2894_s24, 0 }
  0x13   : > { %p299_p2 = scmp.lt.s32.totalorder %s2794_s20, 3  ;;  %s2796_s26 = smov [#allocation6]  }
  0x14   : > { %s312_s27 = sshll.u32 %s2796_s26, 4  ;;  %s3165_s3 = sld [smem:[#allocation30_spill]]  ;;  %s313_s27 = int_to_ptr.vmem [resolvable:$true] %s312_s27 }
  0x15   : > { %p2899_p3 = pnand %p1795_p0, %p299_p2  ;;  %s3167_s5 = sld [smem:[#allocation32_spill]] }
  0x16   : > { %s2797_s16 = smov [#allocation9]   ;;  %s2798_s22 = smov 64  }
  0x17   : > { %s310_s23 = sshll.u32 %s3163_s1, 4  ;;  %p2311_p4 = pneg %p2899_p3  ;;  %s311_s23 = int_to_ptr.hbm [resolvable:$true] %s310_s23 }
  0x18   : > { %s340_s21 = sshll.u32 %s2797_s16, 4  ;;  %s2799_s26 = smov 4   ;;  %s341_s21 = int_to_ptr.vmem [resolvable:$true] %s340_s21 }
  0x19   : > { %p2911_p6 = pnand %p2311_p4, %p53_p1  ;;  %s395_s13 = sshll.u32 %s3152_s7, 4  ;;  %s396_s13 = int_to_ptr.hbm [resolvable:$true] %s395_s13 }
  0x1a   : > { %s338_s30 = sshll.u32 %s3165_s3, 4  ;;  %s2800_s14 = smov [#allocation12]   ;;  %s339_s30 = int_to_ptr.hbm [resolvable:$true] %s338_s30 }
  0x1b   : > { %s366_s15 = sshll.u32 %s3167_s5, 4  ;;  %s368_s16 = sshll.u32 %s2800_s14, 4  ;;  %s367_s15 = int_to_ptr.hbm [resolvable:$true] %s366_s15  ;;  %s369_s16 = int_to_ptr.vmem [resolvable:$true] %s368_s16 }
  0x1c   : > { %2314 = dma.hbm_to_vmem [thread:$0]  (!%p2911_p6), %s311_s23, 2048, %s313_s27, [#allocation7], %s2798_s22, %s2798_s22, %s2799_s26  }
  0x1d   : > { %2320 = dma.hbm_to_vmem [thread:$0]  (!%p2911_p6), %s339_s30, 1024, %s341_s21, [#allocation10], %s2798_s22, %s2798_s22, %s2799_s26  }
  0x1e   : > { %2326 = dma.hbm_to_vmem [thread:$0]  (!%p2911_p6), %s367_s15, 2048, %s369_s16, [#allocation13], %s2798_s22, %s2798_s22, %s2799_s26  }
  0x1f   : > { %s2801_s23 = smov [#allocation15]   ;;  %s3168_s2 = sld [smem:[#allocation29_spill]] }
  0x20   : > { %s397_s27 = sshll.u32 %s2801_s23, 4  ;;  %s3169_s4 = sld [smem:[#allocation31_spill]]  ;;  %s398_s27 = int_to_ptr.vmem [resolvable:$true] %s397_s27 }
  0x21   : > { %2332 = dma.hbm_to_vmem [thread:$0]  (!%p2911_p6), %s396_s13, 128, %s398_s27, [#allocation16]  }
  0x22   : > { %s2802_s14 = smov [#allocation8]   ;;  %s2803_s1 = smov [#allocation11]  }
  0x23   : > { %s326_s5 = sshll.u32 %s2802_s14, 4  ;;  %s354_s3 = sshll.u32 %s2803_s1, 4  ;;  %s327_s5 = int_to_ptr.vmem [resolvable:$true] %s326_s5  ;;  %s355_s3 = int_to_ptr.vmem [resolvable:$true] %s354_s3 }
  0x24   : > { %s3170_s6 = sld [smem:[#allocation33_spill]]  ;;  %s2805_s28 = smov [#allocation17]  }
  0x25   : > { %s324_s30 = sshll.u32 %s3168_s2, 4  ;;  %s419_s1 = sshll.u32 %s3155_s10, 4  ;;  %s325_s30 = int_to_ptr.hbm [resolvable:$true] %s324_s30  ;;  %s420_s1 = int_to_ptr.hbm [resolvable:$true] %s419_s1 }
  0x26   : > { %s352_s29 = sshll.u32 %s3169_s4, 4  ;;  %s1794_s16 = sadd.s32 4294967294, %s2794_s20   ;;  %s353_s29 = int_to_ptr.hbm [resolvable:$true] %s352_s29 }
  0x27   : > { %2317 = dma.hbm_to_vmem [thread:$0]  (!%p2911_p6), %s325_s30, 2048, %s327_s5, [#allocation7], %s2798_s22, %s2798_s22, %s2799_s26  }
  0x28   : > { %2323 = dma.hbm_to_vmem [thread:$0]  (!%p2911_p6), %s353_s29, 2048, %s355_s3, [#allocation10], %s2798_s22, %s2798_s22, %s2799_s26  }
  0x29   : > { %s407_s5 = sshll.u32 %s3153_s8, 4  ;;  %s2804_s30 = smov [#allocation14]   ;;  %s408_s5 = int_to_ptr.vmem [resolvable:$true] %s407_s5 }
  0x2a   : > { %s380_s13 = sshll.u32 %s3170_s6, 4  ;;  %s382_s21 = sshll.u32 %s2804_s30, 4  ;;  %s381_s13 = int_to_ptr.hbm [resolvable:$true] %s380_s13  ;;  %s383_s21 = int_to_ptr.vmem [resolvable:$true] %s382_s21 }
  0x2b   : > { %2329 = dma.hbm_to_vmem [thread:$0]  (!%p2911_p6), %s381_s13, 1024, %s383_s21, [#allocation13], %s2798_s22, %s2798_s22, %s2799_s26  }
  0x2c   : > { %2335 = dma.vmem_to_smem (!%p2911_p6), %s408_s5, 32, %s2805_s28, [#allocation5]  }
  0x2d   : > { %s2806_s3 = smov [#allocation18]   ;;  %s2977_s13 = sadd.s32 1, %s2794_s20  }
  0x2e   : > { %s421_s15 = sshll.u32 %s2806_s3, 4  ;;  %s39_s23 = sadd.s32 1, %s2790_s19  ;;  %s422_s15 = int_to_ptr.vmem [resolvable:$true] %s421_s15 }
  0x2f   : > { %2338 = dma.hbm_to_vmem [thread:$0]  (!%p2911_p6), %s420_s1, 1024, %s422_s15, [#allocation16], %s2798_s22, %s2798_s22, %s2799_s26  }
  0x30   : > { %s36_s27 = ssub.s32 %s2794_s20, %s2977_s13  ;;  %p46_p7 = scmp.ne.s32.totalorder %s2790_s19, %s2786_s18 }
  0x31   : > { %p37_p8 = scmp.eq.s32.totalorder %s36_s27, 0  ;;  %p47_p9 = scmp.eq.s32.totalorder %s2794_s20, 0 }
  0x32   : > { %p52_p10 = scmp.ne.s32.totalorder %s2786_s18, %s2782_s17  ;;  %p286_p11 = scmp.eq.s32.totalorder %s2894_s24, 1 }
  0x33   : > { %s2989_s5 = scalar_select %p37_p8, %s2790_s19, %s39_s23  }
  0x34   : > { %p2991_p12 = por %p47_p9, %p46_p7  ;;  %p2997_p13 = por %p53_p1, %p52_p10 }
  0x35   : > { %p3001_p0 = por %p286_p11, %p46_p7  ;;  %p292_p2 = scmp.eq.s32.totalorder %s1794_s16, 1 }
  0x36   : > { %p2356_p4 = scmp.lt.s32.totalorder %s2794_s20, 2  ;;  %s435_s30 = sand.u32 1, %s2790_s19  }
  0x37   : > { %p3007_p6 = por %p292_p2, %p52_p10  ;;  %s1806_s28 = sshll.u32 %s435_s30, 4 }
  0x38   : > { %s2182_s29 = sshll.u32 %s2794_s20, 4  ;;  %s439_s23 = scalar_lea.vmem [#allocation2], %s1806_s28 }
  0x39   : > { %s444_s3 = scalar_lea.hbm %s3145_s0, %s2182_s29  ;;  %s447_s27 = sshll.u32 %s439_s23, 4  ;;  %s448_s27 = int_to_ptr.vmem [resolvable:$true] %s447_s27 }
  0x3a   : > { %s445_s15 = sshll.u32 %s444_s3, 4  ;;  %p3017_p7 = pnand %p2356_p4, %p2991_p12  ;;  %s446_s15 = int_to_ptr.hbm [resolvable:$true] %s445_s15 }
  0x3b   : > { %s436_s2 = scalar_lea.sflag [#allocation3], %s435_s30  ;;  %s2674_s4 = sshra.s32 %s446_s15, 4  ;;  %s2675_s4 = int_to_ptr.hbm [resolvable:$true] %s2674_s4 }
  0x3c   : > { %s2676_s6 = scalar_lea.hbm %s2675_s4, 16  ;;  %p2678_p9 = pneg %p3017_p7 }
  0x3d   : > { %p2677_p8 = scmp.ne.s32.totalorder %s2675_s4, %s2676_s6  ;;  %s2681_s14 = scalar_lea.hbm %s3145_s0, 32 }
  0x3e   : > { %p2682_p12 = scmp.lt.s32.totalorder %s2675_s4, %s3145_s0  ;;  %p2683_p2 = scmp.lt.s32.totalorder %s2681_s14, %s2676_s6 }
  0x3f   : > { %p2679_p10 = pnand %p2678_p9, %p2677_p8 }
  0x40   : > { %p2684_p4 = por %p2683_p2, %p2682_p12 }
  0x41   : > { %p2680_p11 = pneg %p2679_p10 }
  0x43   : > { %p2685_p5 = pnand %p2684_p4, %p2680_p11 }
  0x45   : > { %2688 = shalt.err (!%p2685_p5)
}
  0x46   : > { %s2807_s30 = smov 128   ;;  %s2808_s3 = smov 8  }
  0x47   : > { %2342 = dma.hbm_to_vmem [thread:$0]  (!%p3017_p7), %s446_s15, 256, %s448_s27, %s436_s2, %s2807_s30, %s2807_s30, %s2808_s3  }
  0x48   : > { %459 = sbr.rel (%p2899_p3) target bundleno = 1024 (0x400), region = 64  ;;  %s3034_s23 = sand.u32 (!%p2899_p3), 1, %s2786_s18  }
  0x49   : > { %s1810_s29 = sshll.u32 (!%p2899_p3), %s3034_s23, 4  ;;  %s462_s4 = scalar_lea.sflag (!%p2899_p3), [#allocation3], %s3034_s23 }
  0x4a   : > { %s3038_s6 = scalar_lea.vmem (!%p2899_p3), [#allocation2], %s1810_s29 }
  0x4d   : > { %2749 = dma.done.wait (%p2997_p13), %s462_s4, 256  }
  0x4e   : > { %2751 = vsyncadd (%p2997_p13), %s462_s4, 4294967040 }
  0x4f   : > { %2753 = dma.done.wait (%p53_p1), [#allocation7], 4096  }
  0x50   : > { %2755 = vsyncadd (%p53_p1), [#allocation7], 4294963200 }
  0x51   : > { %2757 = dma.done.wait (%p53_p1), [#allocation10], 3072  }
  0x52   : > { %2759 = vsyncadd (%p53_p1), [#allocation10], 4294964224 }
  0x53   : > { %2761 = dma.done.wait (%p53_p1), [#allocation13], 3072  }
  0x54   : > { %2763 = vsyncadd (%p53_p1), [#allocation13], 4294964224 }
  0x55   : > { %2765 = dma.done.wait (%p53_p1), [#allocation16], 128  }
  0x56   : > { %2767 = vsyncadd (%p53_p1), [#allocation16], 4294967168 }
  0x57   : > { %2769 = dma.done.wait (%p53_p1), [#allocation5], 32  }
  0x58   : > { %2771 = vsyncadd (%p53_p1), [#allocation5], 4294967264 }
  0x59   : > { %2773 = dma.done.wait (%p53_p1), [#allocation16], 1024  }
  0x5a   : > { %2775 = vsyncadd (%p53_p1), [#allocation16], 4294966272 }
  0x5b   : > { %516 = sfence }
  0x5c   : > { %v2190_v0 = vld [vmem:[#allocation6 + $0x38] sm:$0xff]  ;;  %v552_v2 = vlaneseq  ;;  %v2189_v3 = vld [vmem:[#allocation6 + $0x30] sm:$0xff]  ;;  %v2188_v7 = vld [vmem:[#allocation6 + $0x28] sm:$0xff]  ;;  %v2809_v12 = vmov 0.0   ;;  %s583_s2 = sld [smem:[#allocation17]]  ;;  %s1636_s30 = scalar_lea.hbm %s3156_s11, %s2894_s24 }
  0x5d   : > { %v2198_v1 = vld [vmem:[#allocation6 + $0x78] sm:$0xff]  ;;  %743 = vmatpush.bf16.msra.mxu0 %v2190_v0  ;;  %v2197_v4 = vld [vmem:[#allocation6 + $0x70] sm:$0xff]  ;;  %v2196_v8 = vld [vmem:[#allocation6 + $0x68] sm:$0xff]  ;;  %s3088_s25 = sld [smem:[#allocation17 + $0x1]]  ;;  %s549_s3 = scalar_lea.vmem [#allocation19], %s3034_s23 }
  0x5e   : > { %757 = vmatpush.bf16.msra.mxu1 %v2198_v1  ;;  %v3068_v5 = vshrl.u32 %v552_v2, 7  ;;  %v2214_v9 = vld [vmem:[#allocation8 + $0x78] sm:$0xff]  ;;  %v579_v10 = vld [vmem:[%s3038_s6] sm:$0xff]  ;;  %v2212_v20 = vld [vmem:[#allocation8 + $0x68] sm:$0xff]  ;;  %s3090_s22 = sld [smem:[#allocation17 + $0x2]]  ;;  %s1638_s29 = sshll.u32 %s549_s3, 4  ;;  %s1639_s29 = int_to_ptr.vmem [resolvable:$true] %s1638_s29 }
  0x5f   : > { %v580_v11 = vld [vmem:[%s3038_s6 + $0x8] sm:$0xff]  ;;  %944 = vmatpush.bf16.msra.mxu3 %v2214_v9  ;;  %v2213_v15 = vld [vmem:[#allocation8 + $0x70] sm:$0xff]  ;;  %v2187_v16 = vld [vmem:[#allocation6 + $0x20] sm:$0xff]  ;;  %v592_v18 = vrot.slane %v579_v10, 7  ;;  %v581_v31 = vpack.c.bf16 %v579_v10, %v579_v10  ;;  %s1983_s15 = sld [smem:[#allocation17 + $0x80]]  ;;  %s1640_s4 = sshll.u32 %s1636_s30, 4  ;;  %s1641_s4 = int_to_ptr.hbm [resolvable:$true] %s1640_s4 }
  0x60   : > { %v559_v6 = vand.u32 15, %v3068_v5  ;;  %v2206_v14 = vld [vmem:[#allocation8 + $0x38] sm:$0xff]  ;;  %v2195_v17 = vld [vmem:[#allocation6 + $0x60] sm:$0xff]  ;;  %v593_v19 = vrot.slane %v580_v11, 7  ;;  %vm594_vm2 = vcmp.lt.s32.totalorder %v3068_v5, 1  ;;  %v2185_v26 = vld [vmem:[#allocation6 + $0x10] sm:$0xff]  ;;  %v582_v32 = vpack.c.bf16 %v580_v11, %v580_v11 }
  0x61   : > { %744 = vmatpush.bf16.msra.mxu0 %v2189_v3  ;;  %930 = vmatpush.bf16.msra.mxu2 %v2206_v14  ;;  %v2186_v21 = vld [vmem:[#allocation6 + $0x18] sm:$0xff]  ;;  %v2193_v27 = vld [vmem:[#allocation6 + $0x50] sm:$0xff]  ;;  %v2184_v33 = vld [vmem:[#allocation6 + $0x8] sm:$0xff]  ;;  %v609_v37 = vunpack.c.l.b16 %v581_v31  ;;  %vm1067_vm9 = vcmp.lt.s32.totalorder %v3068_v5, 2  ;;  %s3105_s27 = sld [smem:[#allocation17 + $0x81]]  ;;  %s1628_s6 = scalar_lea.sflag [#allocation4], %s3034_s23 }
  0x62   : > { %758 = vmatpush.bf16.msra.mxu1 %v2197_v4  ;;  %vm1059_vm0 = vcmp.ge.s32.totalorder %v559_v6, 2  ;;  %vm586_vm1 = vcmp.ge.s32.totalorder %v559_v6, 1  ;;  %v2194_v22 = vld [vmem:[#allocation6 + $0x58] sm:$0xff]  ;;  %v596_v24 = vsel %vm594_vm2, %v593_v19, %v592_v18  ;;  %v595_v28 = vsel %vm594_vm2, %v592_v18, %v593_v19  ;;  %v2192_v34 = vld [vmem:[#allocation6 + $0x48] sm:$0xff]  ;;  %v2183_v39 = vld [vmem:[#allocation6] sm:$0xff]  ;;  %s1985_s16 = sld [smem:[#allocation17 + $0x82]] }
  0x63   : > { %v3073_v13 = vsel %vm1059_vm0, 1.0, %v2809_v12  ;;  %945 = vmatpush.bf16.msra.mxu3 %v2213_v15  ;;  %v3076_v23 = vsel %vm586_vm1, 1.0, %v2809_v12  ;;  %v600_v30 = vpack.c.bf16 %v595_v28, %v595_v28  ;;  %v610_v38 = vunpack.c.l.b16 %v582_v32  ;;  %v2191_v40 = vld [vmem:[#allocation6 + $0x40] sm:$0xff]  ;;  %v2222_v41 = vld [vmem:[#allocation9 + $0x38] sm:$0xff]  ;;  %v2205_v44 = vld [vmem:[#allocation8 + $0x30] sm:$0xff]  ;;  %s2724_s24 = scalar_lea.hbm %s3156_s11, 2 }
  0x64   : > { %v597_v25 = vmul.f32 %v3076_v23, %v596_v24  ;;  %v2211_v45 = vld [vmem:[#allocation8 + $0x60] sm:$0xff]  ;;  %v2221_v46 = vld [vmem:[#allocation9 + $0x30] sm:$0xff]  ;;  %v2204_v47 = vld [vmem:[#allocation8 + $0x28] sm:$0xff]  ;;  %vm1529_vm0 = vcmask 130048  }
  0x65   : > { %745 = vmatpush.bf16.msra.mxu0 %v2188_v7  ;;  %v604_v36 = vunpack.c.l.b16 %v600_v30  ;;  %v611_v43 = vpack.c.b16 %v610_v38, %v609_v37  ;;  %931 = vmatpush.bf16.msra.mxu2 %v2205_v44  ;;  %v2210_v48 = vld [vmem:[#allocation8 + $0x58] sm:$0xff]  ;;  %v2220_v49 = vld [vmem:[#allocation9 + $0x28] sm:$0xff]  ;;  %v2203_v50 = vld [vmem:[#allocation8 + $0x20] sm:$0xff]  ;;  %v773_v7 = vstv %s583_s2  ;;  %s2718_s2 = sshra.s32 %s1641_s4, 4  ;;  %s2719_s2 = int_to_ptr.hbm [resolvable:$true] %s2718_s2 }
  0x66   : > { %759 = vmatpush.bf16.msra.mxu1 %v2196_v8  ;;  %v599_v29 = vpack.c.bf16 %v597_v25, %v597_v25  ;;  %v2209_v51 = vld [vmem:[#allocation8 + $0x50] sm:$0xff]  ;;  %v2219_v52 = vld [vmem:[#allocation9 + $0x20] sm:$0xff]  ;;  %v2202_v53 = vld [vmem:[#allocation8 + $0x18] sm:$0xff]  ;;  %p2725_p13 = scmp.lt.s32.totalorder %s2719_s2, %s3156_s11 }
  0x67   : > { %946 = vmatpush.bf16.msra.mxu3 %v2212_v20  ;;  %v2208_v54 = vld [vmem:[#allocation8 + $0x48] sm:$0xff]  ;;  %v2218_v55 = vld [vmem:[#allocation9 + $0x18] sm:$0xff]  ;;  %v2201_v56 = vld [vmem:[#allocation8 + $0x10] sm:$0xff] }
  0x68   : > { %v603_v35 = vunpack.c.l.b16 %v599_v29  ;;  %v2207_v57 = vld [vmem:[#allocation8 + $0x40] sm:$0xff]  ;;  %v2217_v58 = vld [vmem:[#allocation9 + $0x10] sm:$0xff]  ;;  %v2200_v59 = vld [vmem:[#allocation8 + $0x8] sm:$0xff] }
  0x69   : > { %746 = vmatpush.bf16.msra.mxu0 %v2187_v16  ;;  %932 = vmatpush.bf16.msra.mxu2 %v2204_v47  ;;  %v2216_v60 = vld [vmem:[#allocation9 + $0x8] sm:$0xff]  ;;  %v2199_v61 = vld [vmem:[#allocation8] sm:$0xff]  ;;  %v2230_v63 = vld [vmem:[#allocation11 + $0x38] sm:$0xff] }
  0x6a   : > { %760 = vmatpush.bf16.msra.mxu1 %v2195_v17  ;;  %v605_v42 = vpack.c.b16 %v604_v36, %v603_v35  ;;  %v2215_v62 = vld [vmem:[#allocation9] sm:$0xff]  ;;  %v2229_v1 = vld [vmem:[#allocation11 + $0x30] sm:$0xff]  ;;  %v2226_v37 = vld [vmem:[#allocation11 + $0x18] sm:$0xff] }
  0x6b   : > { %947 = vmatpush.bf16.msra.mxu3 %v2211_v45  ;;  %v2413_v0 = vld [vmem:[#allocation15] ss:$0 sm:$0xff]  ;;  %v2237_v36 = vld [vmem:[#allocation11 + $0x70] sm:$0xff]  ;;  %v2236_v38 = vld [vmem:[#allocation11 + $0x68] sm:$0xff] }
  0x6c   : > { %v2227_v35 = vld [vmem:[#allocation11 + $0x20] sm:$0xff]  ;;  %v2262_v44 = vld [vmem:[#allocation14 + $0x38] sm:$0xff]  ;;  %v2232_v45 = vld [vmem:[#allocation11 + $0x48] sm:$0xff] }
  0x6d   : > { %747 = vmatpush.bf16.msra.mxu0 %v2186_v21  ;;  %933 = vmatpush.bf16.msra.mxu2 %v2203_v50  ;;  %v2231_v47 = vld [vmem:[#allocation11 + $0x40] sm:$0xff] }
  0x6e   : > { %761 = vmatpush.bf16.msra.mxu1 %v2194_v22  ;;  %v2415_v50 = vld [vmem:[#allocation15 + $0x1] ss:$0 sm:$0xff] }
  0x6f   : > { %948 = vmatpush.bf16.msra.mxu3 %v2210_v48  ;;  %v2260_v48 = vld [vmem:[#allocation14 + $0x28] sm:$0xff] }
  0x71   : > { %748 = vmatpush.bf16.msra.mxu0 %v2185_v26  ;;  %934 = vmatpush.bf16.msra.mxu2 %v2202_v53  ;;  %v2414_v53 = vld [vmem:[#allocation15 + $0x2] ss:$0 sm:$0xff] }
  0x72   : > { %762 = vmatpush.bf16.msra.mxu1 %v2193_v27 }
  0x73   : > { %949 = vmatpush.bf16.msra.mxu3 %v2209_v51  ;;  %v2258_v51 = vld [vmem:[#allocation14 + $0x18] sm:$0xff] }
  0x75   : > { %749 = vmatpush.bf16.msra.mxu0 %v2184_v33  ;;  %935 = vmatpush.bf16.msra.mxu2 %v2201_v56  ;;  %v2228_v33 = vld [vmem:[#allocation11 + $0x28] sm:$0xff] }
  0x76   : > { %763 = vmatpush.bf16.msra.mxu1 %v2192_v34  ;;  %v2238_v34 = vld [vmem:[#allocation11 + $0x78] sm:$0xff] }
  0x77   : > { %950 = vmatpush.bf16.msra.mxu3 %v2208_v54 }
  0x79   : > { %750 = vmatpush.bf16.msra.mxu0 %v2183_v39  ;;  %936 = vmatpush.bf16.msra.mxu2 %v2200_v59  ;;  %v2235_v39 = vld [vmem:[#allocation11 + $0x60] sm:$0xff] }
  0x7a   : > { %764 = vmatpush.bf16.msra.mxu1 %v2191_v40  ;;  %v2224_v40 = vld [vmem:[#allocation11 + $0x8] sm:$0xff] }
  0x7b   : > { %951 = vmatpush.bf16.msra.mxu3 %v2207_v57  ;;  %v2257_v57 = vld [vmem:[#allocation14 + $0x10] sm:$0xff] }
  0x7c   : > { %751 = vmatmul.bf16.vlgmr.msra.gmra.mxu0 %v605_v42  ;;  %v2223_v42 = vld [vmem:[#allocation11] sm:$0xff] }
  0x7d   : > { %1031 = vmatpush.bf16.msrb.mxu0 %v2222_v41  ;;  %765 = vmatmul.bf16.vlgmr.msra.gmra.mxu1 %v611_v43  ;;  %v2234_v41 = vld [vmem:[#allocation11 + $0x58] sm:$0xff] }
  0x7e   : > { %937 = vmatpush.bf16.msra.mxu2 %v2199_v61  ;;  %1216 = vmatpush.bf16.msrb.mxu1 %v2230_v63 }
  0x81   : > { %1032 = vmatpush.bf16.msrb.mxu0 %v2221_v46  ;;  %v2261_v46 = vld [vmem:[#allocation14 + $0x30] sm:$0xff] }
  0x82   : > { %1217 = vmatpush.bf16.msrb.mxu1 %v2229_v1  ;;  %1230 = vmatpush.bf16.msrb.mxu2 %v2238_v34 }
  0x85   : > { %1033 = vmatpush.bf16.msrb.mxu0 %v2220_v49  ;;  %v2259_v49 = vld [vmem:[#allocation14 + $0x20] sm:$0xff] }
  0x86   : > { %1218 = vmatpush.bf16.msrb.mxu1 %v2228_v33  ;;  %1231 = vmatpush.bf16.msrb.mxu2 %v2237_v36 }
  0x89   : > { %1034 = vmatpush.bf16.msrb.mxu0 %v2219_v52 }
  0x8a   : > { %1219 = vmatpush.bf16.msrb.mxu1 %v2227_v35  ;;  %1232 = vmatpush.bf16.msrb.mxu2 %v2236_v38  ;;  %v2245_v38 = vld [vmem:[#allocation12 + $0x30] sm:$0xff] }
  0x8d   : > { %1035 = vmatpush.bf16.msrb.mxu0 %v2218_v55 }
  0x8e   : > { %1220 = vmatpush.bf16.msrb.mxu1 %v2226_v37  ;;  %1233 = vmatpush.bf16.msrb.mxu2 %v2235_v39  ;;  %v2244_v39 = vld [vmem:[#allocation12 + $0x28] sm:$0xff] }
  0x91   : > { %1036 = vmatpush.bf16.msrb.mxu0 %v2217_v58  ;;  %v960_v58 = vstv %s3088_s25  ;;  %s2720_s25 = scalar_lea.hbm %s2719_s2, 1 }
  0x92   : > { %1234 = vmatpush.bf16.msrb.mxu2 %v2234_v41  ;;  %v2243_v41 = vld [vmem:[#allocation12 + $0x20] sm:$0xff]  ;;  %p2721_p1 = scmp.ne.s32.totalorder %s2719_s2, %s2720_s25  ;;  %p2726_p7 = scmp.lt.s32.totalorder %s2724_s24, %s2720_s25 }
  0x94   : > { %p2722_p3 = pnand %p2721_p1, %p3001_p0  ;;  %p2727_p8 = por %p2726_p7, %p2725_p13 }
  0x95   : > { %1037 = vmatpush.bf16.msrb.mxu0 %v2216_v60 }
  0x96   : > { %p2723_p5 = pneg %p2722_p3 }
  0x98   : > { %p2728_p9 = pnand %p2727_p8, %p2723_p5 }
  0x99   : > { %1038 = vmatpush.bf16.msrb.mxu0 %v2215_v62  ;;  %v2256_v62 = vld [vmem:[#allocation14 + $0x8] sm:$0xff] }
  0x9c   : > { %1039 = vmatmul.bf16.vlgmr.msrb.gmra.mxu0 %v611_v43  ;;  %v2233_v43 = vld [vmem:[#allocation11 + $0x50] sm:$0xff] }
  0x9d   : > { %1235 = vmatpush.bf16.msrb.mxu2 %v2233_v43  ;;  %v2242_v43 = vld [vmem:[#allocation12 + $0x18] sm:$0xff] }
  0xa1   : > { %1236 = vmatpush.bf16.msrb.mxu2 %v2232_v45  ;;  %v2241_v45 = vld [vmem:[#allocation12 + $0x10] sm:$0xff] }
  0xa5   : > { %1237 = vmatpush.bf16.msrb.mxu2 %v2231_v47  ;;  %v2240_v47 = vld [vmem:[#allocation12 + $0x8] sm:$0xff] }
  0xf9   : > { %v752_v2 = vpop.f32.mrf.mxu0 }
  0xfa   : > { %v766_v3 = vpop.f32.mrf.mxu1  ;;  %v753_v4 = vadd.f32 %v2413_v0, %v752_v2 }
  0xfc   : > { %v767_v6 = vadd.f32 %v766_v3, %v753_v4  ;;  %v1049_v3 = vstv %s3090_s22  ;;  %v2255_v4 = vld [vmem:[#allocation14] sm:$0xff] }
  0xfe   : > { %v774_v8 = vmul.f32 %v773_v7, %v767_v6  ;;  %vm771_vm3 = vcmp.ge.f32.partialorder %v767_v6, 0.0 }
 0x100   : > { %v776_v14 = vsel %vm771_vm3, %v767_v6, %v774_v8 }
 0x101   : > { %v754_v9 = vpop.f32.mrf.mxu0  ;;  %v778_v16 = vpack.c.bf16 %v776_v14, %v776_v14  ;;  %v780_v19 = vrot.slane %v776_v14, 7 }
 0x102   : > { %v755_v10 = vadd.f32 %v2413_v0, %v754_v9  ;;  %v768_v11 = vpop.f32.mrf.mxu1 }
 0x103   : > { %v796_v21 = vunpack.c.l.b16 %v778_v16  ;;  %v2254_v16 = vld [vmem:[#allocation12 + $0x78] sm:$0xff] }
 0x104   : > { %v769_v12 = vadd.f32 %v768_v11, %v755_v10  ;;  %1417 = vmatpush.bf16.msra.mxu0 %v2254_v16  ;;  %v2270_v16 = vld [vmem:[#allocation18 + $0x38] sm:$0xff] }
 0x106   : > { %vm772_vm4 = vcmp.ge.f32.partialorder %v769_v12, 0.0  ;;  %v775_v15 = vmul.f32 %v773_v7, %v769_v12 }
 0x108   : > { %v777_v17 = vsel %vm772_vm4, %v769_v12, %v775_v15 }
 0x109   : > { %v779_v18 = vpack.c.bf16 %v777_v17, %v777_v17  ;;  %v781_v20 = vrot.slane %v777_v17, 7  ;;  %v2246_v17 = vld [vmem:[#allocation12 + $0x38] sm:$0xff] }
 0x10a   : > { %1403 = vmatpush.bf16.msrb.mxu3 %v2246_v17  ;;  %v2269_v17 = vld [vmem:[#allocation18 + $0x30] sm:$0xff] }
 0x10b   : > { %v797_v22 = vunpack.c.l.b16 %v779_v18  ;;  %v782_v24 = vsel %vm594_vm2, %v780_v19, %v781_v20  ;;  %v783_v25 = vsel %vm594_vm2, %v781_v20, %v780_v19  ;;  %v2253_v19 = vld [vmem:[#allocation12 + $0x70] sm:$0xff] }
 0x10c   : > { %v784_v26 = vmul.f32 %v3076_v23, %v783_v25  ;;  %v787_v27 = vpack.c.bf16 %v782_v24, %v782_v24  ;;  %v2225_v23 = vld [vmem:[#allocation11 + $0x10] sm:$0xff]  ;;  %1418 = vmatpush.bf16.msra.mxu0 %v2253_v19 }
 0x10d   : > { %v798_v28 = vpack.c.b16 %v797_v22, %v796_v21  ;;  %1221 = vmatpush.bf16.msrb.mxu1 %v2225_v23  ;;  %v2251_v23 = vld [vmem:[#allocation12 + $0x60] sm:$0xff] }
 0x10e   : > { %v786_v29 = vpack.c.bf16 %v784_v26, %v784_v26  ;;  %v791_v31 = vunpack.c.l.b16 %v787_v27  ;;  %v2252_v26 = vld [vmem:[#allocation12 + $0x68] sm:$0xff]  ;;  %1404 = vmatpush.bf16.msrb.mxu3 %v2245_v38  ;;  %v1522_v38 = vstv %s1985_s16 }
 0x10f   : > { %952 = vmatmul.bf16.vlgmr.msra.gmra.mxu3 %v798_v28 }
 0x110   : > { %v790_v30 = vunpack.c.l.b16 %v786_v29  ;;  %1419 = vmatpush.bf16.msra.mxu0 %v2252_v26 }
 0x111   : > { %1222 = vmatpush.bf16.msrb.mxu1 %v2224_v40  ;;  %v2250_v40 = vld [vmem:[#allocation12 + $0x58] sm:$0xff] }
 0x112   : > { %v792_v32 = vpack.c.b16 %v791_v31, %v790_v30  ;;  %1405 = vmatpush.bf16.msrb.mxu3 %v2244_v39 }
 0x114   : > { %938 = vmatmul.bf16.vlgmr.msra.gmra.mxu2 %v792_v32  ;;  %1420 = vmatpush.bf16.msra.mxu0 %v2251_v23 }
 0x115   : > { %1223 = vmatpush.bf16.msrb.mxu1 %v2223_v42  ;;  %v2249_v42 = vld [vmem:[#allocation12 + $0x50] sm:$0xff] }
 0x116   : > { %1406 = vmatpush.bf16.msrb.mxu3 %v2243_v41 }
 0x118   : > { %1421 = vmatpush.bf16.msra.mxu0 %v2250_v40 }
 0x119   : > { %1504 = vmatpush.bf16.msra.mxu1 %v2262_v44  ;;  %v1040_v55 = vpop.f32.mrf.mxu0  ;;  %v2248_v44 = vld [vmem:[#allocation12 + $0x48] sm:$0xff] }
 0x11a   : > { %v1041_v60 = vadd.f32 %v2414_v53, %v1040_v55  ;;  %1407 = vmatpush.bf16.msrb.mxu3 %v2242_v43  ;;  %v2264_v43 = vld [vmem:[#allocation18 + $0x8] sm:$0xff] }
 0x11c   : > { %1422 = vmatpush.bf16.msra.mxu0 %v2249_v42 }
 0x11d   : > { %1505 = vmatpush.bf16.msra.mxu1 %v2261_v46  ;;  %v2247_v46 = vld [vmem:[#allocation12 + $0x40] sm:$0xff] }
 0x11e   : > { %1408 = vmatpush.bf16.msrb.mxu3 %v2241_v45 }
 0x120   : > { %1423 = vmatpush.bf16.msra.mxu0 %v2248_v44 }
 0x121   : > { %1506 = vmatpush.bf16.msra.mxu1 %v2260_v48  ;;  %v1042_v7 = vpop.f32.mrf.mxu0  ;;  %v2239_v48 = vld [vmem:[#allocation12] sm:$0xff] }
 0x122   : > { %v1043_v11 = vadd.f32 %v2414_v53, %v1042_v7  ;;  %1409 = vmatpush.bf16.msrb.mxu3 %v2240_v47 }
 0x124   : > { %1424 = vmatpush.bf16.msra.mxu0 %v2247_v46 }
 0x125   : > { %1507 = vmatpush.bf16.msra.mxu1 %v2259_v49  ;;  %v2416_v49 = vld [vmem:[#allocation15 + $0x3] ss:$0 sm:$0xff] }
 0x126   : > { %1410 = vmatpush.bf16.msrb.mxu3 %v2239_v48  ;;  %v1528_v48 = vld [vmem:[%s3154_s9] sm:$0x1] }
 0x129   : > { %1508 = vmatpush.bf16.msra.mxu1 %v2258_v51 }
 0x12a   : > { %1613 = vmatpush.bf16.msra.mxu3 %v2270_v16 }
 0x12d   : > { %1509 = vmatpush.bf16.msra.mxu1 %v2257_v57 }
 0x12e   : > { %1614 = vmatpush.bf16.msra.mxu3 %v2269_v17 }
 0x131   : > { %1510 = vmatpush.bf16.msra.mxu1 %v2256_v62 }
 0x135   : > { %1511 = vmatpush.bf16.msra.mxu1 %v2255_v4 }
 0x192   : > { %v953_v52 = vpop.f32.mrf.mxu3 }
 0x197   : > { %v939_v54 = vpop.f32.mrf.mxu2 }
 0x198   : > { %v940_v56 = vadd.f32 %v2415_v50, %v939_v54  ;;  %v1246_v54 = vstv %s1983_s15 }
 0x19a   : > { %v954_v59 = vadd.f32 %v953_v52, %v940_v56  ;;  %v955_v6 = vpop.f32.mrf.mxu3 }
 0x19c   : > { %vm958_vm5 = vcmp.ge.f32.partialorder %v954_v59, 0.0  ;;  %v961_v61 = vmul.f32 %v960_v58, %v954_v59 }
 0x19e   : > { %v963_v63 = vsel %vm958_vm5, %v954_v59, %v961_v61 }
 0x19f   : > { %v1045_v0 = vadd.f32 %v1041_v60, %v963_v63  ;;  %v941_v1 = vpop.f32.mrf.mxu2 }
 0x1a0   : > { %v942_v2 = vadd.f32 %v2415_v50, %v941_v1 }
 0x1a1   : > { %v1050_v9 = vmul.f32 %v1049_v3, %v1045_v0  ;;  %vm1047_vm7 = vcmp.ge.f32.partialorder %v1045_v0, 0.0 }
 0x1a2   : > { %v956_v8 = vadd.f32 %v955_v6, %v942_v2 }
 0x1a3   : > { %v1052_v15 = vsel %vm1047_vm7, %v1045_v0, %v1050_v9 }
 0x1a4   : > { %vm959_vm6 = vcmp.ge.f32.partialorder %v956_v8, 0.0  ;;  %v962_v10 = vmul.f32 %v960_v58, %v956_v8  ;;  %v1054_v20 = vpack.c.bf16 %v1052_v15, %v1052_v15  ;;  %v1065_v24 = vrot.slane %v1052_v15, 6 }
 0x1a6   : > { %v964_v12 = vsel %vm959_vm6, %v956_v8, %v962_v10  ;;  %v1082_v27 = vunpack.c.l.b16 %v1054_v20  ;;  %v2268_v20 = vld [vmem:[#allocation18 + $0x28] sm:$0xff] }
 0x1a7   : > { %v1046_v14 = vadd.f32 %v1043_v11, %v964_v12  ;;  %1615 = vmatpush.bf16.msra.mxu3 %v2268_v20 }
 0x1a9   : > { %vm1048_vm8 = vcmp.ge.f32.partialorder %v1046_v14, 0.0  ;;  %v1051_v18 = vmul.f32 %v1049_v3, %v1046_v14 }
 0x1ab   : > { %v1053_v21 = vsel %vm1048_vm8, %v1046_v14, %v1051_v18  ;;  %v2418_v18 = vld [vmem:[#allocation15 + $0x4] ss:$0 sm:$0xff] }
 0x1ac   : > { %v1055_v22 = vpack.c.bf16 %v1053_v21, %v1053_v21  ;;  %v1066_v25 = vrot.slane %v1053_v21, 6 }
 0x1ae   : > { %v1083_v28 = vunpack.c.l.b16 %v1055_v22  ;;  %v1068_v29 = vsel %vm1067_vm9, %v1065_v24, %v1066_v25  ;;  %v1069_v30 = vsel %vm1067_vm9, %v1066_v25, %v1065_v24  ;;  %v1433_v22 = vstv %s3105_s27  ;;  %v2267_v25 = vld [vmem:[#allocation18 + $0x20] sm:$0xff] }
 0x1af   : > { %v1070_v31 = vmul.f32 %v3073_v13, %v1069_v30  ;;  %v1073_v32 = vpack.c.bf16 %v1068_v29, %v1068_v29  ;;  %1616 = vmatpush.bf16.msra.mxu3 %v2267_v25  ;;  %v2266_v29 = vld [vmem:[#allocation18 + $0x18] sm:$0xff] }
 0x1b0   : > { %v1084_v33 = vpack.c.b16 %v1083_v28, %v1082_v27  ;;  %v2417_v27 = vld [vmem:[#allocation15 + $0x5] ss:$0 sm:$0xff] }
 0x1b1   : > { %v1072_v34 = vpack.c.bf16 %v1070_v31, %v1070_v31  ;;  %v1077_v36 = vunpack.c.l.b16 %v1073_v32 }
 0x1b2   : > { %1238 = vmatmul.bf16.vlgmr.msrb.gmra.mxu2 %v1084_v33 }
 0x1b3   : > { %v1076_v35 = vunpack.c.l.b16 %v1072_v34  ;;  %1617 = vmatpush.bf16.msra.mxu3 %v2266_v29 }
 0x1b5   : > { %v1078_v37 = vpack.c.b16 %v1077_v36, %v1076_v35 }
 0x1b7   : > { %1224 = vmatmul.bf16.vlgmr.msrb.gmra.mxu1 %v1078_v37  ;;  %v2265_v37 = vld [vmem:[#allocation18 + $0x10] sm:$0xff] }
 0x1b8   : > { %1618 = vmatpush.bf16.msra.mxu3 %v2265_v37 }
 0x1bc   : > { %1619 = vmatpush.bf16.msra.mxu3 %v2264_v43 }
 0x1c7   : > { %1512 = vmatmul.bf16.vlgmr.msra.gmra.mxu1 %v1084_v33 }
 0x234   : > { %v1225_v50 = vpop.f32.mrf.mxu1 }
 0x235   : > { %v1226_v51 = vadd.f32 %v2416_v49, %v1225_v50  ;;  %v1239_v52 = vpop.f32.mrf.mxu2 }
 0x237   : > { %v1240_v53 = vadd.f32 %v1239_v52, %v1226_v51 }
 0x239   : > { %v1247_v55 = vmul.f32 %v1246_v54, %v1240_v53  ;;  %vm1244_vm10 = vcmp.ge.f32.partialorder %v1240_v53, 0.0 }
 0x23b   : > { %v1249_v59 = vsel %vm1244_vm10, %v1240_v53, %v1247_v55 }
 0x23c   : > { %v1227_v56 = vpop.f32.mrf.mxu1  ;;  %v1251_v62 = vpack.c.bf16 %v1249_v59, %v1249_v59  ;;  %v1253_v0 = vrot.slane %v1249_v59, 6 }
 0x23d   : > { %v1228_v57 = vadd.f32 %v2416_v49, %v1227_v56  ;;  %v1241_v58 = vpop.f32.mrf.mxu2  ;;  %v2263_v49 = vld [vmem:[#allocation18] sm:$0xff] }
 0x23e   : > { %v1269_v3 = vunpack.c.l.b16 %v1251_v62  ;;  %1620 = vmatpush.bf16.msra.mxu3 %v2263_v49 }
 0x23f   : > { %v1242_v60 = vadd.f32 %v1241_v58, %v1228_v57 }
 0x241   : > { %vm1245_vm11 = vcmp.ge.f32.partialorder %v1242_v60, 0.0  ;;  %v1248_v61 = vmul.f32 %v1246_v54, %v1242_v60  ;;  %v1564_v54 = vld [vmem:[#allocation15 + $0x6] sm:$0x1] }
 0x243   : > { %v1250_v63 = vsel %vm1245_vm11, %v1242_v60, %v1248_v61 }
 0x244   : > { %v1252_v1 = vpack.c.bf16 %v1250_v63, %v1250_v63  ;;  %v1254_v2 = vrot.slane %v1250_v63, 6 }
 0x246   : > { %v1270_v4 = vunpack.c.l.b16 %v1252_v1  ;;  %v1255_v6 = vsel %vm1067_vm9, %v1253_v0, %v1254_v2  ;;  %v1256_v7 = vsel %vm1067_vm9, %v1254_v2, %v1253_v0 }
 0x247   : > { %v1257_v8 = vmul.f32 %v3073_v13, %v1256_v7  ;;  %v1260_v9 = vpack.c.bf16 %v1255_v6, %v1255_v6  ;;  %v1513_v13 = vpop.f32.mrf.mxu1 }
 0x248   : > { %v1271_v10 = vpack.c.b16 %v1270_v4, %v1269_v3  ;;  %v1514_v32 = vadd.f32 %v2417_v27, %v1513_v13 }
 0x249   : > { %v1259_v11 = vpack.c.bf16 %v1257_v8, %v1257_v8  ;;  %v1264_v14 = vunpack.c.l.b16 %v1260_v9 }
 0x24a   : > { %1425 = vmatmul.bf16.vlgmr.msra.gmra.mxu0 %v1271_v10 }
 0x24b   : > { %v1263_v12 = vunpack.c.l.b16 %v1259_v11 }
 0x24d   : > { %v1265_v15 = vpack.c.b16 %v1264_v14, %v1263_v12 }
 0x24f   : > { %1411 = vmatmul.bf16.vlgmr.msrb.gmra.mxu3 %v1265_v15  ;;  %v1515_v34 = vpop.f32.mrf.mxu1 }
 0x250   : > { %v1516_v39 = vadd.f32 %v2417_v27, %v1515_v34 }
 0x2c7   : > { %v1426_v19 = vpop.f32.mrf.mxu0 }
 0x2cf   : > { %v1428_v33 = vpop.f32.mrf.mxu0 }
 0x2d2   : > { %v1412_v5 = vpop.f32.mrf.mxu3 }
 0x2d3   : > { %v1413_v21 = vadd.f32 %v2418_v18, %v1412_v5 }
 0x2d5   : > { %v1427_v24 = vadd.f32 %v1426_v19, %v1413_v21 }
 0x2d7   : > { %v1434_v26 = vmul.f32 %v1433_v22, %v1427_v24  ;;  %vm1431_vm12 = vcmp.ge.f32.partialorder %v1427_v24, 0.0 }
 0x2d9   : > { %v1436_v30 = vsel %vm1431_vm12, %v1427_v24, %v1434_v26 }
 0x2da   : > { %v1414_v28 = vpop.f32.mrf.mxu3  ;;  %v1518_v36 = vadd.f32 %v1514_v32, %v1436_v30 }
 0x2db   : > { %v1415_v31 = vadd.f32 %v2418_v18, %v1414_v28 }
 0x2dc   : > { %v1523_v41 = vmul.f32 %v1522_v38, %v1518_v36  ;;  %vm1520_vm14 = vcmp.ge.f32.partialorder %v1518_v36, 0.0 }
 0x2dd   : > { %v1429_v35 = vadd.f32 %v1428_v33, %v1415_v31 }
 0x2de   : > { %v1525_v45 = vsel %vm1520_vm14, %v1518_v36, %v1523_v41 }
 0x2df   : > { %vm1432_vm13 = vcmp.ge.f32.partialorder %v1429_v35, 0.0  ;;  %v1435_v23 = vmul.f32 %v1433_v22, %v1429_v35 }
 0x2e1   : > { %v1437_v40 = vsel %vm1432_vm13, %v1429_v35, %v1435_v23 }
 0x2e2   : > { %v1519_v42 = vadd.f32 %v1516_v39, %v1437_v40 }
 0x2e4   : > { %v1524_v44 = vmul.f32 %v1522_v38, %v1519_v42  ;;  %vm1521_vm15 = vcmp.ge.f32.partialorder %v1519_v42, 0.0 }
 0x2e6   : > { %v1526_v46 = vsel %vm1521_vm15, %v1519_v42, %v1524_v44 }
 0x2e7   : > { %v1527_v47 = vpack.c.bf16 %v1526_v46, %v1525_v45 }
 0x2e9   : > { %1540 = vmatpush.bf16.msra.mxu2 %v1527_v47 }
 0x2ec   : > { %2147 = vmatmul.msk.bf16.vlgmr.msra.gmra.mxu2 %vm1529_vm0, %v1528_v48 }
 0x36f   : > { %v1542_v50 = vpop.f32.mrf.mxu2 }
 0x370   : > { %v1546_v51 = vmul.f32 0.0625, %v1542_v50 }
 0x372   : > { %v1547_v52 = vpack.c.bf16 %v1546_v51, %v1546_v51 }
 0x374   : > { %1621 = vmatmul.bf16.vlgmr.msra.gmra.mxu3 %v1547_v52 }
 0x377   : > { %v1544_v53 = vpop.f32.mrf.mxu2 }
 0x3f7   : > { %v1622_v55 = vpop.f32.mrf.mxu3 }
 0x3f8   : > { %v1623_v56 = vadd.f32 %v1622_v55, %v1564_v54 }
 0x3fa   : > { %1626 = vst [vmem:[%s549_s3] sm:$0x1] %v1623_v56 }
 0x3fb   : > { %2731 = shalt.err (!%p2728_p9)
}
 0x3fc   : > { %2309 = dma.vmem_to_hbm [thread:$0]  (%p3001_p0), %s1639_s29, 16, %s1641_s4, %s1628_s6  }
 0x3ff   : > { %v1624_v57 = vpop.f32.mrf.mxu3 }
 0x400 PF: > { %s1652_s23 = sand.u32 1, %s2782_s17   ;;  %p3176_p10 = scmp.ge.s32.totalorder %s2794_s20, 2 }
 0x401   : > { %s1653_s28 = scalar_lea.sflag [#allocation4], %s1652_s23 }
 0x402   : > { %p2344_p11 = pnand %p3176_p10, %p3007_p6 }
 0x404   : > { %p2345_p12 = pneg %p2344_p11 }
 0x406   : > { %2777 = dma.done.wait (%p2345_p12), %s1653_s28, 16  }
 0x407   : > { %2779 = vsyncadd (%p2345_p12), %s1653_s28, 4294967280  ;;  %p29_p2 = scmp.ge.s32.totalorder %s2977_s13, 4   ;;  %s3177_s17 = smov %s2786_s18 }
 0x408   : > { %s3178_s18 = smov %s2790_s19  ;;  %s3179_s19 = smov %s2989_s5 }
 0x409   : > { %s3180_s20 = smov %s2977_s13  ;;  %31 = sbr.rel (!%p29_p2) target bundleno = 17 (0x11), region = 146 }
 0x40e   :  { %1658 = vsyncpa [#allocation3], 1 }
 0x40f   :  { %1660 = vsyncpa [#allocation3 + $0x1], 1 }
 0x410   :  { %1661 = vsyncpa [#allocation7], 1 }
 0x411   :  { %1662 = vsyncpa [#allocation10], 1 }
 0x412   :  { %1663 = vsyncpa [#allocation13], 1 }
 0x413   :  { %1664 = vsyncpa [#allocation16], 1 }
 0x414   :  { %1665 = vsyncpa [#allocation4], 1 }
 0x415   :  { %1667 = vsyncpa [#allocation4 + $0x1], 1 }
 0x416   :  { %1668 = vsyncpa [#allocation5], 1 }
 0x417   :  { %1670 = vsyncpa [#allocation5 + $0x1], 1 }

</bundles_post_ra>
